<compile_context>
chip_gen: v5e
topology: v5e:2x2
jax: 0.10.0
libtpu: 0.0.40
codegen_flags: <defaults>
</compile_context>

<pallas_src>
import jax
import jax.numpy as jnp
from jax import lax
from jax.experimental import pallas as pl
from jax.experimental.pallas import tpu as pltpu


def _sigmoid(x):
    # explicit form -> lowers to EUP exp + VPU ops
    return 1.0 / (1.0 + jnp.exp(-x))


def mymodel_kernel(
    emb_cat_ref,   # (T, Bb, 2E)  time-major, row t = [emb[t] | emb[T-1-t]]
    wx_ref,        # (2E, 8H)     block-diag fused input weights
    wh_ref,        # (2H, 8H)     block-diag fused hidden weights
    b_ref,         # (1, 8H)      fused biases (b_ih + b_hh, both dirs)
    h0_ref,        # (Bb, 2H)     [h0_fwd | h0_bwd]
    c0_ref,        # (Bb, 2H)
    w1_ref,        # (2H, d_a)    linear_first weight (pre-transposed)
    b1_ref,        # (1, d_a)
    w2_ref,        # (d_a, 3)     linear_second weight (pre-transposed)
    b2_ref,        # (1, 3)
    ncT_ref,       # (2H, C)      pre-normalized, pre-transposed centers
    nfeat_ref,     # out: (Bb, 2H) L2-normalized features
    logits_ref,    # out: (Bb, C)  cosine logits (acos applied outside)
    outs_ref,      # scratch: (T, Bb, 2H) packed bi-LSTM outputs
):
    T, Bb, E2 = emb_cat_ref.shape
    H2 = wh_ref.shape[0]          # 2H
    H = H2 // 2
    H8 = wx_ref.shape[1]          # 8H
    H6 = 3 * H2                   # 6H

    # ---- hoisted input projection: single well-shaped MXU pass ----
    emb_flat = emb_cat_ref[...].reshape(T * Bb, E2)
    gates_x = (jnp.dot(emb_flat, wx_ref[...],
                       preferred_element_type=jnp.float32) + b_ref[...])   # (T*Bb, 8H)

    wh = wh_ref[...]
    h = h0_ref[...]
    c = c0_ref[...]

    # ---- fused bidirectional recurrence, fully unrolled (T static) ----
    # Gate column layout (each slice 2H wide, fwd|bwd interleaved per gate):
    #   [0:2H]=i   [2H:4H]=f   [4H:6H]=o   [6H:8H]=g
    for s in range(T):
        gates = gates_x[s * Bb:(s + 1) * Bb, :] + jnp.dot(
            h, wh, preferred_element_type=jnp.float32)               # (Bb, 8H)
        sg = _sigmoid(gates[:, :H6])                                 # one EUP block
        i_g = sg[:, 0:H2]
        f_g = sg[:, H2:2 * H2]
        o_g = sg[:, 2 * H2:H6]
        g_g = jnp.tanh(gates[:, H6:H8])
        c = f_g * c + i_g * g_g
        h = o_g * jnp.tanh(c)
        # forward half corresponds to time s, backward half to time T-1-s
        outs_ref[s, :, 0:H] = h[:, 0:H]
        outs_ref[T - 1 - s, :, H:H2] = h[:, H:H2]

    # ---- structured self-attention: whole-sequence matmuls ----
    outputs = outs_ref[...]                                          # (T, Bb, 2H)
    out_flat = outputs.reshape(T * Bb, H2)
    s1 = jnp.tanh(jnp.dot(out_flat, w1_ref[...],
                          preferred_element_type=jnp.float32) + b1_ref[...])
    att = (jnp.dot(s1, w2_ref[...],
                   preferred_element_type=jnp.float32) + b2_ref[...])  # (T*Bb, 3)
    att = att.reshape(T, Bb, 3)

    # softmax over the TIME axis (== F.softmax(..., dim=1) on torch's (B, T, 3))
    att = att - jnp.max(att, axis=0, keepdims=True)
    att = jnp.exp(att)
    att = att / jnp.sum(att, axis=0, keepdims=True)

    # bmm(att^T, outputs).sum(heads) / 3:
    # feat[b,d] = sum_t (sum_k att[t,b,k]) * outputs[t,b,d] / 3
    wsum = jnp.sum(att, axis=-1, keepdims=True)                      # (T, Bb, 1)
    feat = jnp.sum(wsum * outputs, axis=0) * (1.0 / 3.0)             # (Bb, 2H)

    # L2-normalize features; centers were normalized/transposed in the wrapper
    nfeat = feat * lax.rsqrt(
        jnp.sum(feat * feat, axis=-1, keepdims=True) + 1e-12)
    nfeat_ref[...] = nfeat
    logits_ref[...] = jnp.dot(nfeat, ncT_ref[...],
                              preferred_element_type=jnp.float32)    # (Bb, C)


def _fuse_dir_weights(wf_t, wb_t, H):
    """Block-diagonally fuse fwd/bwd weights with gate reorder.

    wf_t, wb_t: (in_dim, 4H) with PyTorch gate column order (i, f, g, o).
    Returns (2*in_dim, 8H) with columns [i_f,i_b, f_f,f_b, o_f,o_b, g_f,g_b].
    """
    in_dim = wf_t.shape[0]
    zeros = jnp.zeros((in_dim, H), wf_t.dtype)
    cols = []
    for g in (0, 1, 3, 2):   # i, f, o, g
        cols.append(jnp.concatenate([wf_t[:, g * H:(g + 1) * H], zeros], axis=0))
        cols.append(jnp.concatenate([zeros, wb_t[:, g * H:(g + 1) * H]], axis=0))
    return jnp.concatenate(cols, axis=1)


def _fuse_bias(bf, bb, H):
    parts = []
    for g in (0, 1, 3, 2):   # i, f, o, g
        parts.append(bf[g * H:(g + 1) * H])
        parts.append(bb[g * H:(g + 1) * H])
    return jnp.concatenate(parts)[None, :]            # (1, 8H)


def my_model_forward(x_tokens, h0, c0, params):
    """Embedding gather + weight fusion in plain JAX, then the Pallas kernel."""
    emb = jnp.take(params["embeddings"], x_tokens, axis=0)    # (B, T, E)
    emb = jnp.transpose(emb, (1, 0, 2)).astype(jnp.float32)   # time-major (T, B, E)
    T, B, E = emb.shape
    H = params["lstm_whh_f"].shape[1]
    d_a = params["lin1_w"].shape[0]
    C = params["centers"].shape[0]

    # time-major embeddings with the time-reversed sequence packed alongside
    emb_cat = jnp.concatenate([emb, emb[::-1]], axis=-1)      # (T, B, 2E)

    # block-diagonal fused LSTM weights (gate order i,f,o,g; fwd/bwd interleaved)
    wx = _fuse_dir_weights(params["lstm_wih_f"].T, params["lstm_wih_b"].T, H)  # (2E, 8H)
    wh = _fuse_dir_weights(params["lstm_whh_f"].T, params["lstm_whh_b"].T, H)  # (2H, 8H)
    b = _fuse_bias(params["lstm_bih_f"] + params["lstm_bhh_f"],
                   params["lstm_bih_b"] + params["lstm_bhh_b"], H)             # (1, 8H)

    h0_cat = jnp.concatenate([h0[0], h0[1]], axis=-1)         # (B, 2H) [fwd|bwd]
    c0_cat = jnp.concatenate([c0[0], c0[1]], axis=-1)         # (B, 2H)

    w1 = params["lin1_w"].T                                    # (2H, d_a)
    b1 = params["lin1_b"][None, :]
    w2 = params["lin2_w"].T                                    # (d_a, 3)
    b2 = params["lin2_b"][None, :]

    centers = params["centers"]
    ncT = (centers / jnp.sqrt(
        jnp.sum(centers * centers, axis=-1, keepdims=True))).T  # (2H, C)

    # batch grid: one block at toy shapes; "parallel" lets v7x shard real batches
    block_b = B
    grid = (pl.cdiv(B, block_b),)

    def rep(shape):   # replicated (grid-invariant) operand
        return pl.BlockSpec(shape, lambda i: (0, 0))

    nfeat, logits = pl.pallas_call(
        mymodel_kernel,
        out_shape=(jax.ShapeDtypeStruct((B, 2 * H), jnp.float32),
                   jax.ShapeDtypeStruct((B, C), jnp.float32)),
        grid=grid,
        in_specs=[
            pl.BlockSpec((T, block_b, 2 * E), lambda i: (0, i, 0)),   # emb_cat
            rep((2 * E, 8 * H)),                                      # wx
            rep((2 * H, 8 * H)),                                      # wh
            rep((1, 8 * H)),                                          # b
            pl.BlockSpec((block_b, 2 * H), lambda i: (i, 0)),         # h0_cat
            pl.BlockSpec((block_b, 2 * H), lambda i: (i, 0)),         # c0_cat
            rep((2 * H, d_a)),                                        # w1
            rep((1, d_a)),                                            # b1
            rep((d_a, 3)),                                            # w2
            rep((1, 3)),                                              # b2
            rep((2 * H, C)),                                          # ncT
        ],
        out_specs=(pl.BlockSpec((block_b, 2 * H), lambda i: (i, 0)),
                   pl.BlockSpec((block_b, C), lambda i: (i, 0))),
        scratch_shapes=[pltpu.VMEM((T, block_b, 2 * H), jnp.float32)],
        compiler_params=pltpu.CompilerParams(
            dimension_semantics=("parallel",)),
    )(emb_cat, wx, wh, b, h0_cat, c0_cat, w1, b1, w2, b2, ncT)

    # torch.acos epilogue: tiny (B, C) elementwise op kept in plain JAX.
    # TODO(synk): acos kept outside the kernel (Mosaic acos lowering not
    # guaranteed); clamp kills +-ULP overshoot of the f32 cosine before acos.
    theta = jnp.arccos(jnp.clip(logits, -1.0, 1.0))
    return nfeat, theta


if __name__ == "__main__":
    # small shapes consistent with the module's forward
    B, T = 2, 8            # batch, sequence length
    E = 32                 # embed_size
    H = 16                 # lstm_hid_dim  -> feat_dim = 2H = 32
    D_A = 16               # d_a
    C = 4                  # n_classes
    V = 50                 # vocab_size
    # scale `self.s` is stored but unused in forward()

    key = jax.random.PRNGKey(0)
    ks = jax.random.split(key, 20)

    params = {
        "embeddings": jax.random.normal(ks[0], (V, E), jnp.float32),
        "lstm_wih_f": 0.1 * jax.random.normal(ks[1], (4 * H, E), jnp.float32),
        "lstm_whh_f": 0.1 * jax.random.normal(ks[2], (4 * H, H), jnp.float32),
        "lstm_bih_f": 0.1 * jax.random.normal(ks[3], (4 * H,), jnp.float32),
        "lstm_bhh_f": 0.1 * jax.random.normal(ks[4], (4 * H,), jnp.float32),
        "lstm_wih_b": 0.1 * jax.random.normal(ks[5], (4 * H, E), jnp.float32),
        "lstm_whh_b": 0.1 * jax.random.normal(ks[6], (4 * H, H), jnp.float32),
        "lstm_bih_b": 0.1 * jax.random.normal(ks[7], (4 * H,), jnp.float32),
        "lstm_bhh_b": 0.1 * jax.random.normal(ks[8], (4 * H,), jnp.float32),
        "lin1_w": 0.1 * jax.random.normal(ks[9], (D_A, 2 * H), jnp.float32),
        "lin1_b": 0.1 * jax.random.normal(ks[10], (D_A,), jnp.float32),
        "lin2_w": 0.1 * jax.random.normal(ks[11], (3, D_A), jnp.float32),
        "lin2_b": 0.1 * jax.random.normal(ks[12], (3,), jnp.float32),
        "centers": jax.random.normal(ks[13], (C, 2 * H), jnp.float32),
    }

    # token ids
    x = jax.random.randint(ks[14], (B, T), 0, V, dtype=jnp.int32)
    # init_hidden(): random (h0, c0) of shape (2, B, H), generated deterministically
    h0 = jax.random.normal(ks[15], (2, B, H), jnp.float32)
    c0 = jax.random.normal(ks[16], (2, B, H), jnp.float32)

    fwd = jax.jit(my_model_forward)
    nfeat, theta = fwd(x, h0, c0, params)
    jax.block_until_ready((nfeat, theta))

    assert nfeat.shape == (B, 2 * H) and theta.shape == (B, C)
    assert bool(jnp.all(jnp.isfinite(nfeat))) and bool(jnp.all(jnp.isfinite(theta)))
    print("KERNEL_OK")
</pallas_src>

<mosaic_0001>
module attributes {stable_mosaic.version = 11 : i64} {
  func.func @mymodel_kernel(%arg0: i32, %arg1: memref<8x2x64xf32, #tpu.memory_space<vmem>>, %arg2: memref<64x128xf32, #tpu.memory_space<vmem>>, %arg3: memref<32x128xf32, #tpu.memory_space<vmem>>, %arg4: memref<1x128xf32, #tpu.memory_space<vmem>>, %arg5: memref<2x32xf32, #tpu.memory_space<vmem>>, %arg6: memref<2x32xf32, #tpu.memory_space<vmem>>, %arg7: memref<32x16xf32, #tpu.memory_space<vmem>>, %arg8: memref<1x16xf32, #tpu.memory_space<vmem>>, %arg9: memref<16x3xf32, #tpu.memory_space<vmem>>, %arg10: memref<1x3xf32, #tpu.memory_space<vmem>>, %arg11: memref<32x4xf32, #tpu.memory_space<vmem>>, %arg12: memref<2x32xf32, #tpu.memory_space<vmem>>, %arg13: memref<2x4xf32, #tpu.memory_space<vmem>>, %arg14: memref<8x2x32xf32, #tpu.memory_space<vmem>>) attributes {dimension_semantics = [#tpu.dimension_semantics<parallel>], iteration_bounds = array<i64: 1>, scalar_prefetch = 0 : i64, scratch_operands = 1 : i64, tpu.core_type = #tpu.core_type<tc>, window_params = [{transform_indices = @transform_0, window_bounds = array<i64: 8, 2, 64>}, {pipeline_mode = #tpu.pipeline_mode<synchronous>, transform_indices = @transform_1, window_bounds = array<i64: 64, 128>}, {pipeline_mode = #tpu.pipeline_mode<synchronous>, transform_indices = @transform_2, window_bounds = array<i64: 32, 128>}, {pipeline_mode = #tpu.pipeline_mode<synchronous>, transform_indices = @transform_3, window_bounds = array<i64: 1, 128>}, {transform_indices = @transform_4, window_bounds = array<i64: 2, 32>}, {transform_indices = @transform_5, window_bounds = array<i64: 2, 32>}, {pipeline_mode = #tpu.pipeline_mode<synchronous>, transform_indices = @transform_6, window_bounds = array<i64: 32, 16>}, {pipeline_mode = #tpu.pipeline_mode<synchronous>, transform_indices = @transform_7, window_bounds = array<i64: 1, 16>}, {pipeline_mode = #tpu.pipeline_mode<synchronous>, transform_indices = @transform_8, window_bounds = array<i64: 16, 3>}, {pipeline_mode = #tpu.pipeline_mode<synchronous>, transform_indices = @transform_9, window_bounds = array<i64: 1, 3>}, {pipeline_mode = #tpu.pipeline_mode<synchronous>, transform_indices = @transform_10, window_bounds = array<i64: 32, 4>}, {transform_indices = @transform_11, window_bounds = array<i64: 2, 32>}, {transform_indices = @transform_12, window_bounds = array<i64: 2, 4>}]} {
    %c0 = arith.constant 0 : index
    %c0_0 = arith.constant 0 : index
    %c0_1 = arith.constant 0 : index
    %0 = vector.load %arg1[%c0, %c0_0, %c0_1] : memref<8x2x64xf32, #tpu.memory_space<vmem>>, vector<8x2x64xf32>
    %1 = vector.shape_cast %0 : vector<8x2x64xf32> to vector<16x64xf32>
    %c0_2 = arith.constant 0 : index
    %c0_3 = arith.constant 0 : index
    %2 = vector.load %arg2[%c0_2, %c0_3] : memref<64x128xf32, #tpu.memory_space<vmem>>, vector<64x128xf32>
    %cst = arith.constant dense<0.000000e+00> : vector<16x128xf32>
    %3 = tpu.matmul %1, %2, %cst {dimension_numbers = #tpu.dot_dimension_numbers<[1], [0], [0], [1], [0, 0, 1, 1], [], []>} : vector<16x64xf32>, vector<64x128xf32>, vector<16x128xf32> -> vector<16x128xf32>
    %c0_4 = arith.constant 0 : index
    %c0_5 = arith.constant 0 : index
    %4 = vector.load %arg4[%c0_4, %c0_5] : memref<1x128xf32, #tpu.memory_space<vmem>>, vector<1x128xf32>
    %5 = vector.broadcast %4 : vector<1x128xf32> to vector<16x128xf32>
    %6 = arith.addf %3, %5 : vector<16x128xf32>
    %c0_6 = arith.constant 0 : index
    %c0_7 = arith.constant 0 : index
    %7 = vector.load %arg3[%c0_6, %c0_7] : memref<32x128xf32, #tpu.memory_space<vmem>>, vector<32x128xf32>
    %c0_8 = arith.constant 0 : index
    %c0_9 = arith.constant 0 : index
    %8 = vector.load %arg5[%c0_8, %c0_9] : memref<2x32xf32, #tpu.memory_space<vmem>>, vector<2x32xf32>
    %c0_10 = arith.constant 0 : index
    %c0_11 = arith.constant 0 : index
    %9 = vector.load %arg6[%c0_10, %c0_11] : memref<2x32xf32, #tpu.memory_space<vmem>>, vector<2x32xf32>
    %10 = vector.extract_strided_slice %6 {offsets = [0, 0], sizes = [2, 128], strides = [1, 1]} : vector<16x128xf32> to vector<2x128xf32>
    %cst_12 = arith.constant dense<0.000000e+00> : vector<2x128xf32>
    %11 = tpu.matmul %8, %7, %cst_12 {dimension_numbers = #tpu.dot_dimension_numbers<[1], [0], [0], [1], [0, 0, 1, 1], [], []>} : vector<2x32xf32>, vector<32x128xf32>, vector<2x128xf32> -> vector<2x128xf32>
    %12 = arith.addf %10, %11 : vector<2x128xf32>
    %13 = vector.extract_strided_slice %12 {offsets = [0, 0], sizes = [2, 96], strides = [1, 1]} : vector<2x128xf32> to vector<2x96xf32>
    %cst_13 = arith.constant 0.000000e+00 : f32
    %14 = vector.broadcast %cst_13 : f32 to vector<2x96xf32>
    %15 = arith.subf %14, %13 : vector<2x96xf32>
    %16 = math.exp %15 : vector<2x96xf32>
    %cst_14 = arith.constant 1.000000e+00 : f32
    %17 = vector.broadcast %cst_14 : f32 to vector<2x96xf32>
    %18 = arith.addf %17, %16 : vector<2x96xf32>
    %cst_15 = arith.constant 1.000000e+00 : f32
    %19 = vector.broadcast %cst_15 : f32 to vector<2x96xf32>
    %20 = arith.divf %19, %18 : vector<2x96xf32>
    %21 = vector.extract_strided_slice %20 {offsets = [0, 0], sizes = [2, 32], strides = [1, 1]} : vector<2x96xf32> to vector<2x32xf32>
    %22 = vector.extract_strided_slice %20 {offsets = [0, 32], sizes = [2, 32], strides = [1, 1]} : vector<2x96xf32> to vector<2x32xf32>
    %23 = vector.extract_strided_slice %20 {offsets = [0, 64], sizes = [2, 32], strides = [1, 1]} : vector<2x96xf32> to vector<2x32xf32>
    %24 = vector.extract_strided_slice %12 {offsets = [0, 96], sizes = [2, 32], strides = [1, 1]} : vector<2x128xf32> to vector<2x32xf32>
    %25 = math.tanh %24 : vector<2x32xf32>
    %26 = arith.mulf %22, %9 : vector<2x32xf32>
    %27 = arith.mulf %21, %25 : vector<2x32xf32>
    %28 = arith.addf %26, %27 : vector<2x32xf32>
    %29 = math.tanh %28 : vector<2x32xf32>
    %30 = arith.mulf %23, %29 : vector<2x32xf32>
    %31 = vector.extract_strided_slice %30 {offsets = [0, 0], sizes = [2, 16], strides = [1, 1]} : vector<2x32xf32> to vector<2x16xf32>
    %c0_16 = arith.constant 0 : index
    %c0_17 = arith.constant 0 : index
    %c0_18 = arith.constant 0 : index
    %32 = vector.load %arg14[%c0_16, %c0_17, %c0_18] : memref<8x2x32xf32, #tpu.memory_space<vmem>>, vector<1x2x16xf32>
    %33 = vector.shape_cast %32 : vector<1x2x16xf32> to vector<2x16xf32>
    %34 = vector.shape_cast %31 : vector<2x16xf32> to vector<1x2x16xf32>
    tpu.vector_store %arg14[%c0_16, %c0_17, %c0_18], %34 {strides = array<i32>} : memref<8x2x32xf32, #tpu.memory_space<vmem>>, vector<1x2x16xf32>,
    %35 = vector.extract_strided_slice %30 {offsets = [0, 16], sizes = [2, 16], strides = [1, 1]} : vector<2x32xf32> to vector<2x16xf32>
    %c7 = arith.constant 7 : index
    %c0_19 = arith.constant 0 : index
    %c16 = arith.constant 16 : index
    %36 = vector.load %arg14[%c7, %c0_19, %c16] : memref<8x2x32xf32, #tpu.memory_space<vmem>>, vector<1x2x16xf32>
    %37 = vector.shape_cast %36 : vector<1x2x16xf32> to vector<2x16xf32>
    %38 = vector.shape_cast %35 : vector<2x16xf32> to vector<1x2x16xf32>
    tpu.vector_store %arg14[%c7, %c0_19, %c16], %38 {strides = array<i32>} : memref<8x2x32xf32, #tpu.memory_space<vmem>>, vector<1x2x16xf32>,
    %39 = vector.extract_strided_slice %6 {offsets = [2, 0], sizes = [2, 128], strides = [1, 1]} : vector<16x128xf32> to vector<2x128xf32>
    %cst_20 = arith.constant dense<0.000000e+00> : vector<2x128xf32>
    %40 = tpu.matmul %30, %7, %cst_20 {dimension_numbers = #tpu.dot_dimension_numbers<[1], [0], [0], [1], [0, 0, 1, 1], [], []>} : vector<2x32xf32>, vector<32x128xf32>, vector<2x128xf32> -> vector<2x128xf32>
    %41 = arith.addf %39, %40 : vector<2x128xf32>
    %42 = vector.extract_strided_slice %41 {offsets = [0, 0], sizes = [2, 96], strides = [1, 1]} : vector<2x128xf32> to vector<2x96xf32>
    %cst_21 = arith.constant 0.000000e+00 : f32
    %43 = vector.broadcast %cst_21 : f32 to vector<2x96xf32>
    %44 = arith.subf %43, %42 : vector<2x96xf32>
    %45 = math.exp %44 : vector<2x96xf32>
    %cst_22 = arith.constant 1.000000e+00 : f32
    %46 = vector.broadcast %cst_22 : f32 to vector<2x96xf32>
    %47 = arith.addf %46, %45 : vector<2x96xf32>
    %cst_23 = arith.constant 1.000000e+00 : f32
    %48 = vector.broadcast %cst_23 : f32 to vector<2x96xf32>
    %49 = arith.divf %48, %47 : vector<2x96xf32>
    %50 = vector.extract_strided_slice %49 {offsets = [0, 0], sizes = [2, 32], strides = [1, 1]} : vector<2x96xf32> to vector<2x32xf32>
    %51 = vector.extract_strided_slice %49 {offsets = [0, 32], sizes = [2, 32], strides = [1, 1]} : vector<2x96xf32> to vector<2x32xf32>
    %52 = vector.extract_strided_slice %49 {offsets = [0, 64], sizes = [2, 32], strides = [1, 1]} : vector<2x96xf32> to vector<2x32xf32>
    %53 = vector.extract_strided_slice %41 {offsets = [0, 96], sizes = [2, 32], strides = [1, 1]} : vector<2x128xf32> to vector<2x32xf32>
    %54 = math.tanh %53 : vector<2x32xf32>
    %55 = arith.mulf %51, %28 : vector<2x32xf32>
    %56 = arith.mulf %50, %54 : vector<2x32xf32>
    %57 = arith.addf %55, %56 : vector<2x32xf32>
    %58 = math.tanh %57 : vector<2x32xf32>
    %59 = arith.mulf %52, %58 : vector<2x32xf32>
    %60 = vector.extract_strided_slice %59 {offsets = [0, 0], sizes = [2, 16], strides = [1, 1]} : vector<2x32xf32> to vector<2x16xf32>
    %c1 = arith.constant 1 : index
    %c0_24 = arith.constant 0 : index
    %c0_25 = arith.constant 0 : index
    %61 = vector.load %arg14[%c1, %c0_24, %c0_25] : memref<8x2x32xf32, #tpu.memory_space<vmem>>, vector<1x2x16xf32>
    %62 = vector.shape_cast %61 : vector<1x2x16xf32> to vector<2x16xf32>
    %63 = vector.shape_cast %60 : vector<2x16xf32> to vector<1x2x16xf32>
    tpu.vector_store %arg14[%c1, %c0_24, %c0_25], %63 {strides = array<i32>} : memref<8x2x32xf32, #tpu.memory_space<vmem>>, vector<1x2x16xf32>,
    %64 = vector.extract_strided_slice %59 {offsets = [0, 16], sizes = [2, 16], strides = [1, 1]} : vector<2x32xf32> to vector<2x16xf32>
    %c6 = arith.constant 6 : index
    %c0_26 = arith.constant 0 : index
    %c16_27 = arith.constant 16 : index
    %65 = vector.load %arg14[%c6, %c0_26, %c16_27] : memref<8x2x32xf32, #tpu.memory_space<vmem>>, vector<1x2x16xf32>
    %66 = vector.shape_cast %65 : vector<1x2x16xf32> to vector<2x16xf32>
    %67 = vector.shape_cast %64 : vector<2x16xf32> to vector<1x2x16xf32>
    tpu.vector_store %arg14[%c6, %c0_26, %c16_27], %67 {strides = array<i32>} : memref<8x2x32xf32, #tpu.memory_space<vmem>>, vector<1x2x16xf32>,
    %68 = vector.extract_strided_slice %6 {offsets = [4, 0], sizes = [2, 128], strides = [1, 1]} : vector<16x128xf32> to vector<2x128xf32>
    %cst_28 = arith.constant dense<0.000000e+00> : vector<2x128xf32>
    %69 = tpu.matmul %59, %7, %cst_28 {dimension_numbers = #tpu.dot_dimension_numbers<[1], [0], [0], [1], [0, 0, 1, 1], [], []>} : vector<2x32xf32>, vector<32x128xf32>, vector<2x128xf32> -> vector<2x128xf32>
    %70 = arith.addf %68, %69 : vector<2x128xf32>
    %71 = vector.extract_strided_slice %70 {offsets = [0, 0], sizes = [2, 96], strides = [1, 1]} : vector<2x128xf32> to vector<2x96xf32>
    %cst_29 = arith.constant 0.000000e+00 : f32
    %72 = vector.broadcast %cst_29 : f32 to vector<2x96xf32>
    %73 = arith.subf %72, %71 : vector<2x96xf32>
    %74 = math.exp %73 : vector<2x96xf32>
    %cst_30 = arith.constant 1.000000e+00 : f32
    %75 = vector.broadcast %cst_30 : f32 to vector<2x96xf32>
    %76 = arith.addf %75, %74 : vector<2x96xf32>
    %cst_31 = arith.constant 1.000000e+00 : f32
    %77 = vector.broadcast %cst_31 : f32 to vector<2x96xf32>
    %78 = arith.divf %77, %76 : vector<2x96xf32>
    %79 = vector.extract_strided_slice %78 {offsets = [0, 0], sizes = [2, 32], strides = [1, 1]} : vector<2x96xf32> to vector<2x32xf32>
    %80 = vector.extract_strided_slice %78 {offsets = [0, 32], sizes = [2, 32], strides = [1, 1]} : vector<2x96xf32> to vector<2x32xf32>
    %81 = vector.extract_strided_slice %78 {offsets = [0, 64], sizes = [2, 32], strides = [1, 1]} : vector<2x96xf32> to vector<2x32xf32>
    %82 = vector.extract_strided_slice %70 {offsets = [0, 96], sizes = [2, 32], strides = [1, 1]} : vector<2x128xf32> to vector<2x32xf32>
    %83 = math.tanh %82 : vector<2x32xf32>
    %84 = arith.mulf %80, %57 : vector<2x32xf32>
    %85 = arith.mulf %79, %83 : vector<2x32xf32>
    %86 = arith.addf %84, %85 : vector<2x32xf32>
    %87 = math.tanh %86 : vector<2x32xf32>
    %88 = arith.mulf %81, %87 : vector<2x32xf32>
    %89 = vector.extract_strided_slice %88 {offsets = [0, 0], sizes = [2, 16], strides = [1, 1]} : vector<2x32xf32> to vector<2x16xf32>
    %c2 = arith.constant 2 : index
    %c0_32 = arith.constant 0 : index
    %c0_33 = arith.constant 0 : index
    %90 = vector.load %arg14[%c2, %c0_32, %c0_33] : memref<8x2x32xf32, #tpu.memory_space<vmem>>, vector<1x2x16xf32>
    %91 = vector.shape_cast %90 : vector<1x2x16xf32> to vector<2x16xf32>
    %92 = vector.shape_cast %89 : vector<2x16xf32> to vector<1x2x16xf32>
    tpu.vector_store %arg14[%c2, %c0_32, %c0_33], %92 {strides = array<i32>} : memref<8x2x32xf32, #tpu.memory_space<vmem>>, vector<1x2x16xf32>,
    %93 = vector.extract_strided_slice %88 {offsets = [0, 16], sizes = [2, 16], strides = [1, 1]} : vector<2x32xf32> to vector<2x16xf32>
    %c5 = arith.constant 5 : index
    %c0_34 = arith.constant 0 : index
    %c16_35 = arith.constant 16 : index
    %94 = vector.load %arg14[%c5, %c0_34, %c16_35] : memref<8x2x32xf32, #tpu.memory_space<vmem>>, vector<1x2x16xf32>
    %95 = vector.shape_cast %94 : vector<1x2x16xf32> to vector<2x16xf32>
    %96 = vector.shape_cast %93 : vector<2x16xf32> to vector<1x2x16xf32>
    tpu.vector_store %arg14[%c5, %c0_34, %c16_35], %96 {strides = array<i32>} : memref<8x2x32xf32, #tpu.memory_space<vmem>>, vector<1x2x16xf32>,
    %97 = vector.extract_strided_slice %6 {offsets = [6, 0], sizes = [2, 128], strides = [1, 1]} : vector<16x128xf32> to vector<2x128xf32>
    %cst_36 = arith.constant dense<0.000000e+00> : vector<2x128xf32>
    %98 = tpu.matmul %88, %7, %cst_36 {dimension_numbers = #tpu.dot_dimension_numbers<[1], [0], [0], [1], [0, 0, 1, 1], [], []>} : vector<2x32xf32>, vector<32x128xf32>, vector<2x128xf32> -> vector<2x128xf32>
    %99 = arith.addf %97, %98 : vector<2x128xf32>
    %100 = vector.extract_strided_slice %99 {offsets = [0, 0], sizes = [2, 96], strides = [1, 1]} : vector<2x128xf32> to vector<2x96xf32>
    %cst_37 = arith.constant 0.000000e+00 : f32
    %101 = vector.broadcast %cst_37 : f32 to vector<2x96xf32>
    %102 = arith.subf %101, %100 : vector<2x96xf32>
    %103 = math.exp %102 : vector<2x96xf32>
    %cst_38 = arith.constant 1.000000e+00 : f32
    %104 = vector.broadcast %cst_38 : f32 to vector<2x96xf32>
    %105 = arith.addf %104, %103 : vector<2x96xf32>
    %cst_39 = arith.constant 1.000000e+00 : f32
    %106 = vector.broadcast %cst_39 : f32 to vector<2x96xf32>
    %107 = arith.divf %106, %105 : vector<2x96xf32>
    %108 = vector.extract_strided_slice %107 {offsets = [0, 0], sizes = [2, 32], strides = [1, 1]} : vector<2x96xf32> to vector<2x32xf32>
    %109 = vector.extract_strided_slice %107 {offsets = [0, 32], sizes = [2, 32], strides = [1, 1]} : vector<2x96xf32> to vector<2x32xf32>
    %110 = vector.extract_strided_slice %107 {offsets = [0, 64], sizes = [2, 32], strides = [1, 1]} : vector<2x96xf32> to vector<2x32xf32>
    %111 = vector.extract_strided_slice %99 {offsets = [0, 96], sizes = [2, 32], strides = [1, 1]} : vector<2x128xf32> to vector<2x32xf32>
    %112 = math.tanh %111 : vector<2x32xf32>
    %113 = arith.mulf %109, %86 : vector<2x32xf32>
    %114 = arith.mulf %108, %112 : vector<2x32xf32>
    %115 = arith.addf %113, %114 : vector<2x32xf32>
    %116 = math.tanh %115 : vector<2x32xf32>
    %117 = arith.mulf %110, %116 : vector<2x32xf32>
    %118 = vector.extract_strided_slice %117 {offsets = [0, 0], sizes = [2, 16], strides = [1, 1]} : vector<2x32xf32> to vector<2x16xf32>
    %c3 = arith.constant 3 : index
    %c0_40 = arith.constant 0 : index
    %c0_41 = arith.constant 0 : index
    %119 = vector.load %arg14[%c3, %c0_40, %c0_41] : memref<8x2x32xf32, #tpu.memory_space<vmem>>, vector<1x2x16xf32>
    %120 = vector.shape_cast %119 : vector<1x2x16xf32> to vector<2x16xf32>
    %121 = vector.shape_cast %118 : vector<2x16xf32> to vector<1x2x16xf32>
    tpu.vector_store %arg14[%c3, %c0_40, %c0_41], %121 {strides = array<i32>} : memref<8x2x32xf32, #tpu.memory_space<vmem>>, vector<1x2x16xf32>,
    %122 = vector.extract_strided_slice %117 {offsets = [0, 16], sizes = [2, 16], strides = [1, 1]} : vector<2x32xf32> to vector<2x16xf32>
    %c4 = arith.constant 4 : index
    %c0_42 = arith.constant 0 : index
    %c16_43 = arith.constant 16 : index
    %123 = vector.load %arg14[%c4, %c0_42, %c16_43] : memref<8x2x32xf32, #tpu.memory_space<vmem>>, vector<1x2x16xf32>
    %124 = vector.shape_cast %123 : vector<1x2x16xf32> to vector<2x16xf32>
    %125 = vector.shape_cast %122 : vector<2x16xf32> to vector<1x2x16xf32>
    tpu.vector_store %arg14[%c4, %c0_42, %c16_43], %125 {strides = array<i32>} : memref<8x2x32xf32, #tpu.memory_space<vmem>>, vector<1x2x16xf32>,
    %126 = vector.extract_strided_slice %6 {offsets = [8, 0], sizes = [2, 128], strides = [1, 1]} : vector<16x128xf32> to vector<2x128xf32>
    %cst_44 = arith.constant dense<0.000000e+00> : vector<2x128xf32>
    %127 = tpu.matmul %117, %7, %cst_44 {dimension_numbers = #tpu.dot_dimension_numbers<[1], [0], [0], [1], [0, 0, 1, 1], [], []>} : vector<2x32xf32>, vector<32x128xf32>, vector<2x128xf32> -> vector<2x128xf32>
    %128 = arith.addf %126, %127 : vector<2x128xf32>
    %129 = vector.extract_strided_slice %128 {offsets = [0, 0], sizes = [2, 96], strides = [1, 1]} : vector<2x128xf32> to vector<2x96xf32>
    %cst_45 = arith.constant 0.000000e+00 : f32
    %130 = vector.broadcast %cst_45 : f32 to vector<2x96xf32>
    %131 = arith.subf %130, %129 : vector<2x96xf32>
    %132 = math.exp %131 : vector<2x96xf32>
    %cst_46 = arith.constant 1.000000e+00 : f32
    %133 = vector.broadcast %cst_46 : f32 to vector<2x96xf32>
    %134 = arith.addf %133, %132 : vector<2x96xf32>
    %cst_47 = arith.constant 1.000000e+00 : f32
    %135 = vector.broadcast %cst_47 : f32 to vector<2x96xf32>
    %136 = arith.divf %135, %134 : vector<2x96xf32>
    %137 = vector.extract_strided_slice %136 {offsets = [0, 0], sizes = [2, 32], strides = [1, 1]} : vector<2x96xf32> to vector<2x32xf32>
    %138 = vector.extract_strided_slice %136 {offsets = [0, 32], sizes = [2, 32], strides = [1, 1]} : vector<2x96xf32> to vector<2x32xf32>
    %139 = vector.extract_strided_slice %136 {offsets = [0, 64], sizes = [2, 32], strides = [1, 1]} : vector<2x96xf32> to vector<2x32xf32>
    %140 = vector.extract_strided_slice %128 {offsets = [0, 96], sizes = [2, 32], strides = [1, 1]} : vector<2x128xf32> to vector<2x32xf32>
    %141 = math.tanh %140 : vector<2x32xf32>
    %142 = arith.mulf %138, %115 : vector<2x32xf32>
    %143 = arith.mulf %137, %141 : vector<2x32xf32>
    %144 = arith.addf %142, %143 : vector<2x32xf32>
    %145 = math.tanh %144 : vector<2x32xf32>
    %146 = arith.mulf %139, %145 : vector<2x32xf32>
    %147 = vector.extract_strided_slice %146 {offsets = [0, 0], sizes = [2, 16], strides = [1, 1]} : vector<2x32xf32> to vector<2x16xf32>
    %c4_48 = arith.constant 4 : index
    %c0_49 = arith.constant 0 : index
    %c0_50 = arith.constant 0 : index
    %148 = vector.load %arg14[%c4_48, %c0_49, %c0_50] : memref<8x2x32xf32, #tpu.memory_space<vmem>>, vector<1x2x16xf32>
    %149 = vector.shape_cast %148 : vector<1x2x16xf32> to vector<2x16xf32>
    %150 = vector.shape_cast %147 : vector<2x16xf32> to vector<1x2x16xf32>
    tpu.vector_store %arg14[%c4_48, %c0_49, %c0_50], %150 {strides = array<i32>} : memref<8x2x32xf32, #tpu.memory_space<vmem>>, vector<1x2x16xf32>,
    %151 = vector.extract_strided_slice %146 {offsets = [0, 16], sizes = [2, 16], strides = [1, 1]} : vector<2x32xf32> to vector<2x16xf32>
    %c3_51 = arith.constant 3 : index
    %c0_52 = arith.constant 0 : index
    %c16_53 = arith.constant 16 : index
    %152 = vector.load %arg14[%c3_51, %c0_52, %c16_53] : memref<8x2x32xf32, #tpu.memory_space<vmem>>, vector<1x2x16xf32>
    %153 = vector.shape_cast %152 : vector<1x2x16xf32> to vector<2x16xf32>
    %154 = vector.shape_cast %151 : vector<2x16xf32> to vector<1x2x16xf32>
    tpu.vector_store %arg14[%c3_51, %c0_52, %c16_53], %154 {strides = array<i32>} : memref<8x2x32xf32, #tpu.memory_space<vmem>>, vector<1x2x16xf32>,
    %155 = vector.extract_strided_slice %6 {offsets = [10, 0], sizes = [2, 128], strides = [1, 1]} : vector<16x128xf32> to vector<2x128xf32>
    %cst_54 = arith.constant dense<0.000000e+00> : vector<2x128xf32>
    %156 = tpu.matmul %146, %7, %cst_54 {dimension_numbers = #tpu.dot_dimension_numbers<[1], [0], [0], [1], [0, 0, 1, 1], [], []>} : vector<2x32xf32>, vector<32x128xf32>, vector<2x128xf32> -> vector<2x128xf32>
    %157 = arith.addf %155, %156 : vector<2x128xf32>
    %158 = vector.extract_strided_slice %157 {offsets = [0, 0], sizes = [2, 96], strides = [1, 1]} : vector<2x128xf32> to vector<2x96xf32>
    %cst_55 = arith.constant 0.000000e+00 : f32
    %159 = vector.broadcast %cst_55 : f32 to vector<2x96xf32>
    %160 = arith.subf %159, %158 : vector<2x96xf32>
    %161 = math.exp %160 : vector<2x96xf32>
    %cst_56 = arith.constant 1.000000e+00 : f32
    %162 = vector.broadcast %cst_56 : f32 to vector<2x96xf32>
    %163 = arith.addf %162, %161 : vector<2x96xf32>
    %cst_57 = arith.constant 1.000000e+00 : f32
    %164 = vector.broadcast %cst_57 : f32 to vector<2x96xf32>
    %165 = arith.divf %164, %163 : vector<2x96xf32>
    %166 = vector.extract_strided_slice %165 {offsets = [0, 0], sizes = [2, 32], strides = [1, 1]} : vector<2x96xf32> to vector<2x32xf32>
    %167 = vector.extract_strided_slice %165 {offsets = [0, 32], sizes = [2, 32], strides = [1, 1]} : vector<2x96xf32> to vector<2x32xf32>
    %168 = vector.extract_strided_slice %165 {offsets = [0, 64], sizes = [2, 32], strides = [1, 1]} : vector<2x96xf32> to vector<2x32xf32>
    %169 = vector.extract_strided_slice %157 {offsets = [0, 96], sizes = [2, 32], strides = [1, 1]} : vector<2x128xf32> to vector<2x32xf32>
    %170 = math.tanh %169 : vector<2x32xf32>
    %171 = arith.mulf %167, %144 : vector<2x32xf32>
    %172 = arith.mulf %166, %170 : vector<2x32xf32>
    %173 = arith.addf %171, %172 : vector<2x32xf32>
    %174 = math.tanh %173 : vector<2x32xf32>
    %175 = arith.mulf %168, %174 : vector<2x32xf32>
    %176 = vector.extract_strided_slice %175 {offsets = [0, 0], sizes = [2, 16], strides = [1, 1]} : vector<2x32xf32> to vector<2x16xf32>
    %c5_58 = arith.constant 5 : index
    %c0_59 = arith.constant 0 : index
    %c0_60 = arith.constant 0 : index
    %177 = vector.load %arg14[%c5_58, %c0_59, %c0_60] : memref<8x2x32xf32, #tpu.memory_space<vmem>>, vector<1x2x16xf32>
    %178 = vector.shape_cast %177 : vector<1x2x16xf32> to vector<2x16xf32>
    %179 = vector.shape_cast %176 : vector<2x16xf32> to vector<1x2x16xf32>
    tpu.vector_store %arg14[%c5_58, %c0_59, %c0_60], %179 {strides = array<i32>} : memref<8x2x32xf32, #tpu.memory_space<vmem>>, vector<1x2x16xf32>,
    %180 = vector.extract_strided_slice %175 {offsets = [0, 16], sizes = [2, 16], strides = [1, 1]} : vector<2x32xf32> to vector<2x16xf32>
    %c2_61 = arith.constant 2 : index
    %c0_62 = arith.constant 0 : index
    %c16_63 = arith.constant 16 : index
    %181 = vector.load %arg14[%c2_61, %c0_62, %c16_63] : memref<8x2x32xf32, #tpu.memory_space<vmem>>, vector<1x2x16xf32>
    %182 = vector.shape_cast %181 : vector<1x2x16xf32> to vector<2x16xf32>
    %183 = vector.shape_cast %180 : vector<2x16xf32> to vector<1x2x16xf32>
    tpu.vector_store %arg14[%c2_61, %c0_62, %c16_63], %183 {strides = array<i32>} : memref<8x2x32xf32, #tpu.memory_space<vmem>>, vector<1x2x16xf32>,
    %184 = vector.extract_strided_slice %6 {offsets = [12, 0], sizes = [2, 128], strides = [1, 1]} : vector<16x128xf32> to vector<2x128xf32>
    %cst_64 = arith.constant dense<0.000000e+00> : vector<2x128xf32>
    %185 = tpu.matmul %175, %7, %cst_64 {dimension_numbers = #tpu.dot_dimension_numbers<[1], [0], [0], [1], [0, 0, 1, 1], [], []>} : vector<2x32xf32>, vector<32x128xf32>, vector<2x128xf32> -> vector<2x128xf32>
    %186 = arith.addf %184, %185 : vector<2x128xf32>
    %187 = vector.extract_strided_slice %186 {offsets = [0, 0], sizes = [2, 96], strides = [1, 1]} : vector<2x128xf32> to vector<2x96xf32>
    %cst_65 = arith.constant 0.000000e+00 : f32
    %188 = vector.broadcast %cst_65 : f32 to vector<2x96xf32>
    %189 = arith.subf %188, %187 : vector<2x96xf32>
    %190 = math.exp %189 : vector<2x96xf32>
    %cst_66 = arith.constant 1.000000e+00 : f32
    %191 = vector.broadcast %cst_66 : f32 to vector<2x96xf32>
    %192 = arith.addf %191, %190 : vector<2x96xf32>
    %cst_67 = arith.constant 1.000000e+00 : f32
    %193 = vector.broadcast %cst_67 : f32 to vector<2x96xf32>
    %194 = arith.divf %193, %192 : vector<2x96xf32>
    %195 = vector.extract_strided_slice %194 {offsets = [0, 0], sizes = [2, 32], strides = [1, 1]} : vector<2x96xf32> to vector<2x32xf32>
    %196 = vector.extract_strided_slice %194 {offsets = [0, 32], sizes = [2, 32], strides = [1, 1]} : vector<2x96xf32> to vector<2x32xf32>
    %197 = vector.extract_strided_slice %194 {offsets = [0, 64], sizes = [2, 32], strides = [1, 1]} : vector<2x96xf32> to vector<2x32xf32>
    %198 = vector.extract_strided_slice %186 {offsets = [0, 96], sizes = [2, 32], strides = [1, 1]} : vector<2x128xf32> to vector<2x32xf32>
    %199 = math.tanh %198 : vector<2x32xf32>
    %200 = arith.mulf %196, %173 : vector<2x32xf32>
    %201 = arith.mulf %195, %199 : vector<2x32xf32>
    %202 = arith.addf %200, %201 : vector<2x32xf32>
    %203 = math.tanh %202 : vector<2x32xf32>
    %204 = arith.mulf %197, %203 : vector<2x32xf32>
    %205 = vector.extract_strided_slice %204 {offsets = [0, 0], sizes = [2, 16], strides = [1, 1]} : vector<2x32xf32> to vector<2x16xf32>
    %c6_68 = arith.constant 6 : index
    %c0_69 = arith.constant 0 : index
    %c0_70 = arith.constant 0 : index
    %206 = vector.load %arg14[%c6_68, %c0_69, %c0_70] : memref<8x2x32xf32, #tpu.memory_space<vmem>>, vector<1x2x16xf32>
    %207 = vector.shape_cast %206 : vector<1x2x16xf32> to vector<2x16xf32>
    %208 = vector.shape_cast %205 : vector<2x16xf32> to vector<1x2x16xf32>
    tpu.vector_store %arg14[%c6_68, %c0_69, %c0_70], %208 {strides = array<i32>} : memref<8x2x32xf32, #tpu.memory_space<vmem>>, vector<1x2x16xf32>,
    %209 = vector.extract_strided_slice %204 {offsets = [0, 16], sizes = [2, 16], strides = [1, 1]} : vector<2x32xf32> to vector<2x16xf32>
    %c1_71 = arith.constant 1 : index
    %c0_72 = arith.constant 0 : index
    %c16_73 = arith.constant 16 : index
    %210 = vector.load %arg14[%c1_71, %c0_72, %c16_73] : memref<8x2x32xf32, #tpu.memory_space<vmem>>, vector<1x2x16xf32>
    %211 = vector.shape_cast %210 : vector<1x2x16xf32> to vector<2x16xf32>
    %212 = vector.shape_cast %209 : vector<2x16xf32> to vector<1x2x16xf32>
    tpu.vector_store %arg14[%c1_71, %c0_72, %c16_73], %212 {strides = array<i32>} : memref<8x2x32xf32, #tpu.memory_space<vmem>>, vector<1x2x16xf32>,
    %213 = vector.extract_strided_slice %6 {offsets = [14, 0], sizes = [2, 128], strides = [1, 1]} : vector<16x128xf32> to vector<2x128xf32>
    %cst_74 = arith.constant dense<0.000000e+00> : vector<2x128xf32>
    %214 = tpu.matmul %204, %7, %cst_74 {dimension_numbers = #tpu.dot_dimension_numbers<[1], [0], [0], [1], [0, 0, 1, 1], [], []>} : vector<2x32xf32>, vector<32x128xf32>, vector<2x128xf32> -> vector<2x128xf32>
    %215 = arith.addf %213, %214 : vector<2x128xf32>
    %216 = vector.extract_strided_slice %215 {offsets = [0, 0], sizes = [2, 96], strides = [1, 1]} : vector<2x128xf32> to vector<2x96xf32>
    %cst_75 = arith.constant 0.000000e+00 : f32
    %217 = vector.broadcast %cst_75 : f32 to vector<2x96xf32>
    %218 = arith.subf %217, %216 : vector<2x96xf32>
    %219 = math.exp %218 : vector<2x96xf32>
    %cst_76 = arith.constant 1.000000e+00 : f32
    %220 = vector.broadcast %cst_76 : f32 to vector<2x96xf32>
    %221 = arith.addf %220, %219 : vector<2x96xf32>
    %cst_77 = arith.constant 1.000000e+00 : f32
    %222 = vector.broadcast %cst_77 : f32 to vector<2x96xf32>
    %223 = arith.divf %222, %221 : vector<2x96xf32>
    %224 = vector.extract_strided_slice %223 {offsets = [0, 0], sizes = [2, 32], strides = [1, 1]} : vector<2x96xf32> to vector<2x32xf32>
    %225 = vector.extract_strided_slice %223 {offsets = [0, 32], sizes = [2, 32], strides = [1, 1]} : vector<2x96xf32> to vector<2x32xf32>
    %226 = vector.extract_strided_slice %223 {offsets = [0, 64], sizes = [2, 32], strides = [1, 1]} : vector<2x96xf32> to vector<2x32xf32>
    %227 = vector.extract_strided_slice %215 {offsets = [0, 96], sizes = [2, 32], strides = [1, 1]} : vector<2x128xf32> to vector<2x32xf32>
    %228 = math.tanh %227 : vector<2x32xf32>
    %229 = arith.mulf %225, %202 : vector<2x32xf32>
    %230 = arith.mulf %224, %228 : vector<2x32xf32>
    %231 = arith.addf %229, %230 : vector<2x32xf32>
    %232 = math.tanh %231 : vector<2x32xf32>
    %233 = arith.mulf %226, %232 : vector<2x32xf32>
    %234 = vector.extract_strided_slice %233 {offsets = [0, 0], sizes = [2, 16], strides = [1, 1]} : vector<2x32xf32> to vector<2x16xf32>
    %c7_78 = arith.constant 7 : index
    %c0_79 = arith.constant 0 : index
    %c0_80 = arith.constant 0 : index
    %235 = vector.load %arg14[%c7_78, %c0_79, %c0_80] : memref<8x2x32xf32, #tpu.memory_space<vmem>>, vector<1x2x16xf32>
    %236 = vector.shape_cast %235 : vector<1x2x16xf32> to vector<2x16xf32>
    %237 = vector.shape_cast %234 : vector<2x16xf32> to vector<1x2x16xf32>
    tpu.vector_store %arg14[%c7_78, %c0_79, %c0_80], %237 {strides = array<i32>} : memref<8x2x32xf32, #tpu.memory_space<vmem>>, vector<1x2x16xf32>,
    %238 = vector.extract_strided_slice %233 {offsets = [0, 16], sizes = [2, 16], strides = [1, 1]} : vector<2x32xf32> to vector<2x16xf32>
    %c0_81 = arith.constant 0 : index
    %c0_82 = arith.constant 0 : index
    %c16_83 = arith.constant 16 : index
    %239 = vector.load %arg14[%c0_81, %c0_82, %c16_83] : memref<8x2x32xf32, #tpu.memory_space<vmem>>, vector<1x2x16xf32>
    %240 = vector.shape_cast %239 : vector<1x2x16xf32> to vector<2x16xf32>
    %241 = vector.shape_cast %238 : vector<2x16xf32> to vector<1x2x16xf32>
    tpu.vector_store %arg14[%c0_81, %c0_82, %c16_83], %241 {strides = array<i32>} : memref<8x2x32xf32, #tpu.memory_space<vmem>>, vector<1x2x16xf32>,
    %c0_84 = arith.constant 0 : index
    %c0_85 = arith.constant 0 : index
    %c0_86 = arith.constant 0 : index
    %242 = vector.load %arg14[%c0_84, %c0_85, %c0_86] : memref<8x2x32xf32, #tpu.memory_space<vmem>>, vector<8x2x32xf32>
    %243 = vector.shape_cast %242 : vector<8x2x32xf32> to vector<16x32xf32>
    %c0_87 = arith.constant 0 : index
    %c0_88 = arith.constant 0 : index
    %244 = vector.load %arg7[%c0_87, %c0_88] : memref<32x16xf32, #tpu.memory_space<vmem>>, vector<32x16xf32>
    %cst_89 = arith.constant dense<0.000000e+00> : vector<16x16xf32>
    %245 = tpu.matmul %243, %244, %cst_89 {dimension_numbers = #tpu.dot_dimension_numbers<[1], [0], [0], [1], [0, 0, 1, 1], [], []>} : vector<16x32xf32>, vector<32x16xf32>, vector<16x16xf32> -> vector<16x16xf32>
    %c0_90 = arith.constant 0 : index
    %c0_91 = arith.constant 0 : index
    %246 = vector.load %arg8[%c0_90, %c0_91] : memref<1x16xf32, #tpu.memory_space<vmem>>, vector<1x16xf32>
    %247 = vector.broadcast %246 : vector<1x16xf32> to vector<16x16xf32>
    %248 = arith.addf %245, %247 : vector<16x16xf32>
    %249 = math.tanh %248 : vector<16x16xf32>
    %c0_92 = arith.constant 0 : index
    %c0_93 = arith.constant 0 : index
    %250 = vector.load %arg9[%c0_92, %c0_93] : memref<16x3xf32, #tpu.memory_space<vmem>>, vector<16x3xf32>
    %cst_94 = arith.constant dense<0.000000e+00> : vector<16x3xf32>
    %251 = tpu.matmul %249, %250, %cst_94 {dimension_numbers = #tpu.dot_dimension_numbers<[1], [0], [0], [1], [0, 0, 1, 1], [], []>} : vector<16x16xf32>, vector<16x3xf32>, vector<16x3xf32> -> vector<16x3xf32>
    %c0_95 = arith.constant 0 : index
    %c0_96 = arith.constant 0 : index
    %252 = vector.load %arg10[%c0_95, %c0_96] : memref<1x3xf32, #tpu.memory_space<vmem>>, vector<1x3xf32>
    %253 = vector.broadcast %252 : vector<1x3xf32> to vector<16x3xf32>
    %254 = arith.addf %251, %253 : vector<16x3xf32>
    %255 = vector.shape_cast %254 : vector<16x3xf32> to vector<8x2x3xf32>
    %cst_97 = arith.constant dense<0xFF800000> : vector<2x3xf32>
    %256 = vector.multi_reduction <maximumf>, %255, %cst_97 [0] : vector<8x2x3xf32> to vector<2x3xf32>
    %257 = vector.shape_cast %256 : vector<2x3xf32> to vector<1x2x3xf32>
    %258 = vector.broadcast %257 : vector<1x2x3xf32> to vector<8x2x3xf32>
    %259 = arith.subf %255, %258 : vector<8x2x3xf32>
    %260 = math.exp %259 : vector<8x2x3xf32>
    %cst_98 = arith.constant dense<0.000000e+00> : vector<2x3xf32>
    %261 = vector.multi_reduction <add>, %260, %cst_98 [0] : vector<8x2x3xf32> to vector<2x3xf32>
    %262 = vector.shape_cast %261 : vector<2x3xf32> to vector<1x2x3xf32>
    %263 = vector.broadcast %262 : vector<1x2x3xf32> to vector<8x2x3xf32>
    %264 = arith.divf %260, %263 : vector<8x2x3xf32>
    %cst_99 = arith.constant dense<0.000000e+00> : vector<8x2xf32>
    %265 = vector.multi_reduction <add>, %264, %cst_99 [2] : vector<8x2x3xf32> to vector<8x2xf32>
    %266 = vector.shape_cast %265 : vector<8x2xf32> to vector<8x2x1xf32>
    %267 = vector.broadcast %266 : vector<8x2x1xf32> to vector<8x2x32xf32>
    %268 = arith.mulf %267, %242 : vector<8x2x32xf32>
    %cst_100 = arith.constant dense<0.000000e+00> : vector<2x32xf32>
    %269 = vector.multi_reduction <add>, %268, %cst_100 [0] : vector<8x2x32xf32> to vector<2x32xf32>
    %cst_101 = arith.constant 0.333333343 : f32
    %270 = vector.broadcast %cst_101 : f32 to vector<2x32xf32>
    %271 = arith.mulf %269, %270 : vector<2x32xf32>
    %272 = arith.mulf %271, %271 : vector<2x32xf32>
    %cst_102 = arith.constant dense<0.000000e+00> : vector<2xf32>
    %273 = vector.multi_reduction <add>, %272, %cst_102 [1] : vector<2x32xf32> to vector<2xf32>
    %274 = vector.shape_cast %273 : vector<2xf32> to vector<2x1xf32>
    %cst_103 = arith.constant 9.99999996E-13 : f32
    %275 = vector.broadcast %cst_103 : f32 to vector<2x1xf32>
    %276 = arith.addf %274, %275 : vector<2x1xf32>
    %277 = math.rsqrt %276 : vector<2x1xf32>
    %278 = vector.broadcast %277 : vector<2x1xf32> to vector<2x32xf32>
    %279 = arith.mulf %271, %278 : vector<2x32xf32>
    %c0_104 = arith.constant 0 : index
    %c0_105 = arith.constant 0 : index
    %280 = vector.load %arg12[%c0_104, %c0_105] : memref<2x32xf32, #tpu.memory_space<vmem>>, vector<2x32xf32>
    tpu.vector_store %arg12[%c0_104, %c0_105], %279 {strides = array<i32>} : memref<2x32xf32, #tpu.memory_space<vmem>>, vector<2x32xf32>,
    %c0_106 = arith.constant 0 : index
    %c0_107 = arith.constant 0 : index
    %281 = vector.load %arg11[%c0_106, %c0_107] : memref<32x4xf32, #tpu.memory_space<vmem>>, vector<32x4xf32>
    %cst_108 = arith.constant dense<0.000000e+00> : vector<2x4xf32>
    %282 = tpu.matmul %279, %281, %cst_108 {dimension_numbers = #tpu.dot_dimension_numbers<[1], [0], [0], [1], [0, 0, 1, 1], [], []>} : vector<2x32xf32>, vector<32x4xf32>, vector<2x4xf32> -> vector<2x4xf32>
    %c0_109 = arith.constant 0 : index
    %c0_110 = arith.constant 0 : index
    %283 = vector.load %arg13[%c0_109, %c0_110] : memref<2x4xf32, #tpu.memory_space<vmem>>, vector<2x4xf32>
    tpu.vector_store %arg13[%c0_109, %c0_110], %282 {strides = array<i32>} : memref<2x4xf32, #tpu.memory_space<vmem>>, vector<2x4xf32>,
    return
  }
  func.func @transform_0(%arg0: i32) -> (i32, i32, i32) {
    %c0_i32 = arith.constant 0 : i32
    %c0_i32_0 = arith.constant 0 : i32
    %c0_i32_1 = arith.constant 0 : i32
    return %c0_i32, %arg0, %c0_i32_0 : i32, i32, i32
  }
  func.func @transform_1(%arg0: i32) -> (i32, i32) {
    %c0_i32 = arith.constant 0 : i32
    %c0_i32_0 = arith.constant 0 : i32
    %c0_i32_1 = arith.constant 0 : i32
    return %c0_i32, %c0_i32_0 : i32, i32
  }
  func.func @transform_2(%arg0: i32) -> (i32, i32) {
    %c0_i32 = arith.constant 0 : i32
    %c0_i32_0 = arith.constant 0 : i32
    %c0_i32_1 = arith.constant 0 : i32
    return %c0_i32, %c0_i32_0 : i32, i32
  }
  func.func @transform_3(%arg0: i32) -> (i32, i32) {
    %c0_i32 = arith.constant 0 : i32
    %c0_i32_0 = arith.constant 0 : i32
    %c0_i32_1 = arith.constant 0 : i32
    return %c0_i32, %c0_i32_0 : i32, i32
  }
  func.func @transform_4(%arg0: i32) -> (i32, i32) {
    %c0_i32 = arith.constant 0 : i32
    %c0_i32_0 = arith.constant 0 : i32
    return %arg0, %c0_i32 : i32, i32
  }
  func.func @transform_5(%arg0: i32) -> (i32, i32) {
    %c0_i32 = arith.constant 0 : i32
    %c0_i32_0 = arith.constant 0 : i32
    return %arg0, %c0_i32 : i32, i32
  }
  func.func @transform_6(%arg0: i32) -> (i32, i32) {
    %c0_i32 = arith.constant 0 : i32
    %c0_i32_0 = arith.constant 0 : i32
    %c0_i32_1 = arith.constant 0 : i32
    return %c0_i32, %c0_i32_0 : i32, i32
  }
  func.func @transform_7(%arg0: i32) -> (i32, i32) {
    %c0_i32 = arith.constant 0 : i32
    %c0_i32_0 = arith.constant 0 : i32
    %c0_i32_1 = arith.constant 0 : i32
    return %c0_i32, %c0_i32_0 : i32, i32
  }
  func.func @transform_8(%arg0: i32) -> (i32, i32) {
    %c0_i32 = arith.constant 0 : i32
    %c0_i32_0 = arith.constant 0 : i32
    %c0_i32_1 = arith.constant 0 : i32
    return %c0_i32, %c0_i32_0 : i32, i32
  }
  func.func @transform_9(%arg0: i32) -> (i32, i32) {
    %c0_i32 = arith.constant 0 : i32
    %c0_i32_0 = arith.constant 0 : i32
    %c0_i32_1 = arith.constant 0 : i32
    return %c0_i32, %c0_i32_0 : i32, i32
  }
  func.func @transform_10(%arg0: i32) -> (i32, i32) {
    %c0_i32 = arith.constant 0 : i32
    %c0_i32_0 = arith.constant 0 : i32
    %c0_i32_1 = arith.constant 0 : i32
    return %c0_i32, %c0_i32_0 : i32, i32
  }
  func.func @transform_11(%arg0: i32) -> (i32, i32) {
    %c0_i32 = arith.constant 0 : i32
    %c0_i32_0 = arith.constant 0 : i32
    return %arg0, %c0_i32 : i32, i32
  }
  func.func @transform_12(%arg0: i32) -> (i32, i32) {
    %c0_i32 = arith.constant 0 : i32
    %c0_i32_0 = arith.constant 0 : i32
    return %arg0, %c0_i32 : i32, i32
  }
}

</mosaic_0001>

<bundles_post_ra>
// kernel: my_model_forward.1
= control target key start
LH: loop header
LB: loop body
LE: loop exit
PB: predicated region body
PF: predicated region fallthrough
CT: control target
= control target key end

     0   :  { %vm120_vm0 = vcmask 261120   ;;  %s1553_s0 = inlined_call_operand.vmem [shape: f32[8,2,64], index: 0, kind: input, shape index: {}]   ;;  %s1554_s1 = inlined_call_operand.vmem [shape: f32[64,128], index: 1, kind: input, shape index: {}]   ;;  %s1555_s2 = inlined_call_operand.vmem [shape: f32[32,128], index: 2, kind: input, shape index: {}]   ;;  %s1556_s3 = inlined_call_operand.vmem [shape: f32[1,128], index: 3, kind: input, shape index: {}]   ;;  %s1557_s4 = inlined_call_operand.vmem [shape: f32[2,32], index: 4, kind: input, shape index: {}]   ;;  %s1558_s5 = inlined_call_operand.vmem [shape: f32[2,32], index: 5, kind: input, shape index: {}]   ;;  %s1559_s6 = inlined_call_operand.vmem [shape: f32[32,16], index: 6, kind: input, shape index: {}]   ;;  %s1560_s7 = inlined_call_operand.vmem [shape: f32[1,16], index: 7, kind: input, shape index: {}]   ;;  %s1561_s8 = inlined_call_operand.vmem [shape: f32[16,3], index: 8, kind: input, shape index: {}]   ;;  %s1562_s9 = inlined_call_operand.vmem [shape: f32[1,3], index: 9, kind: input, shape index: {}]   ;;  %s1563_s10 = inlined_call_operand.vmem [shape: f32[32,4], index: 10, kind: input, shape index: {}]   ;;  %s1564_s11 = inlined_call_operand.hbm [shape: f32[2,32], index: 11, kind: output, shape index: {0}]   ;;  %s1565_s12 = inlined_call_operand.vmem [shape: f32[2,4], index: 12, kind: output, shape index: {1}]  }
   0x1   :  { %v56_v0 = vld [vmem:[%s1554_s1 + $0x38] sm:$0xff]  ;;  %v55_v1 = vld [vmem:[%s1554_s1 + $0x30] sm:$0xff]  ;;  %v54_v2 = vld [vmem:[%s1554_s1 + $0x28] sm:$0xff] }
   0x2   :  { %99 = vmatpush.msra.mxu0 %v56_v0  ;;  %v1252_v3 = vld [vmem:[%s1555_s2 + $0x18] sm:$0xff]  ;;  %v1257_v4 = vld [vmem:[%s1555_s2 + $0x10] sm:$0xff]  ;;  %v53_v5 = vld [vmem:[%s1554_s1 + $0x20] sm:$0xff] }
   0x3   :  { %136 = vmatpush.msra.mxu1 %v1252_v3  ;;  %v41_v6 = vld [vmem:[%s1553_s0] sm:$0x3]  ;;  %v1269_v7 = vld [vmem:[%s1555_s2 + $0x8] sm:$0xff]  ;;  %v42_v8 = vld [vmem:[%s1553_s0 + $0x2] sm:$0x3]  ;;  %209 = vmatpush.msra.mxu2 %v1252_v3 }
   0x4   :  { %100 = vmatpush.msra.mxu0 %v55_v1  ;;  %v43_v9 = vld [vmem:[%s1553_s0 + $0x4] sm:$0x3]  ;;  %288 = vmatpush.msra.mxu3 %v1252_v3  ;;  %v52_v10 = vld [vmem:[%s1554_s1 + $0x18] sm:$0xff]  ;;  %v44_v11 = vld [vmem:[%s1553_s0 + $0x6] sm:$0x3] }
   0x5   :  { %137 = vmatpush.msra.mxu1 %v1257_v4  ;;  %69 = vst [vmem:[#allocation1] ss:$4 sm:$0xff] %v41_v6  ;;  %v1289_v12 = vld [vmem:[%s1555_s2] sm:$0xff]  ;;  %210 = vmatpush.msra.mxu2 %v1257_v4  ;;  %v51_v14 = vld [vmem:[%s1554_s1 + $0x10] sm:$0xff] }
   0x6   :  { %101 = vmatpush.msra.mxu0 %v54_v2  ;;  %71 = vst [vmem:[#allocation1 + $0x1] ss:$4 sm:$0xff] %v42_v8  ;;  %v118_v13 = vld [vmem:[%s1557_s4] sm:$0x3]  ;;  %289 = vmatpush.msra.mxu3 %v1257_v4 }
   0x7   :  { %138 = vmatpush.msra.mxu1 %v1269_v7  ;;  %73 = vst [vmem:[#allocation1 + $0x2] ss:$4 sm:$0xff] %v43_v9  ;;  %211 = vmatpush.msra.mxu2 %v1269_v7 }
   0x8   :  { %102 = vmatpush.msra.mxu0 %v53_v5  ;;  %75 = vst [vmem:[#allocation1 + $0x3] ss:$4 sm:$0xff] %v44_v11  ;;  %290 = vmatpush.msra.mxu3 %v1269_v7 }
   0x9   :  { %18 = vsyncpa [#allocation4], 0  ;;  %139 = vmatpush.msra.mxu1 %v1289_v12  ;;  %v50_v15 = vld [vmem:[%s1554_s1 + $0x8] sm:$0xff]  ;;  %212 = vmatpush.msra.mxu2 %v1289_v12  ;;  %v49_v16 = vld [vmem:[%s1554_s1] sm:$0xff]  ;;  %vm86_vm1 = vcmask 523264   ;;  %s1172_s18 = smov 32  }
   0xa   :  { %103 = vmatpush.msra.mxu0 %v52_v10  ;;  %1037 = vmatmul.msk.f32.vlgmr.msra.gmra.mxu1 %vm120_vm0, %v118_v13  ;;  %v1332_v18 = vld [vmem:[%s1556_s3] ss:$0 sm:$0xff]  ;;  %s1173_s3 = smov 64   ;;  %vm190_vm6 = vcmask 123904   ;;  %vm193_vm7 = vcmask 255104   ;;  %s1174_s26 = smov [#allocation3]  }
   0xb   :  { %291 = vmatpush.msra.mxu3 %v1289_v12  ;;  %367 = vmatpush.msrb.mxu1 %v1252_v3  ;;  %v119_v24 = vld [vmem:[%s1558_s5] sm:$0x3]  ;;  %s1020_s27 = sshll.u32 %s1174_s26, 4  ;;  %s1021_s27 = int_to_ptr.vmem [resolvable:$true] %s1020_s27 }
   0xc   :  { %104 = vmatpush.msra.mxu0 %v51_v14  ;;  %446 = vmatpush.msrb.mxu2 %v1252_v3 }
   0xd   :  { %515 = vmatpush.msrb.mxu3 %v1252_v3  ;;  %368 = vmatpush.msrb.mxu1 %v1257_v4 }
   0xe   :  { %105 = vmatpush.msra.mxu0 %v50_v15  ;;  %447 = vmatpush.msrb.mxu2 %v1257_v4 }
   0xf   :  { %v84_v17 = vld.sshfl [vmem:[#allocation1] sm:$0xff pattern:$0x73625140]  ;;  %516 = vmatpush.msrb.mxu3 %v1257_v4  ;;  %369 = vmatpush.msrb.mxu1 %v1269_v7 }
  0x10   :  { %106 = vmatpush.msra.mxu0 %v49_v16  ;;  %448 = vmatpush.msrb.mxu2 %v1269_v7 }
  0x11   :  { %1035 = vmatmul.msk.f32.vlgmr.msra.gmra.mxu0 %vm86_vm1, %v84_v17  ;;  %517 = vmatpush.msrb.mxu3 %v1269_v7 }
  0x12   :  { %370 = vmatpush.msrb.mxu1 %v1289_v12  ;;  %449 = vmatpush.msrb.mxu2 %v1289_v12 }
  0x13   :  { %518 = vmatpush.msrb.mxu3 %v1289_v12 }
  0x14   :  { %590 = vmatpush.msra.mxu1 %v1252_v3 }
  0x16   :  { %591 = vmatpush.msra.mxu1 %v1257_v4 }
  0x18   :  { %592 = vmatpush.msra.mxu1 %v1269_v7 }
  0x1a   :  { %593 = vmatpush.msra.mxu1 %v1289_v12 }
  0x87   :  { %v141_v20 = vpop.f32.mrf.mxu1 }
  0x8e   :  { %v108_v19 = vpop.f32.mrf.mxu0 }
  0x8f   :  { %v1335_v21 = vadd.f32 %v1332_v18, %v108_v19 }
  0x91   :  { %v144_v22 = vadd.f32 %v141_v20, %v1335_v21 }
  0x93   :  { %1058 = vtanh.f32 %v144_v22  ;;  %v145_v25 = vsub.f32 0.0, %v144_v22 }
  0x95   :  { %v146_v26 = vmul.f32 1.442695, %v145_v25 }
  0x97   :  { %1060 = vpow2.f32 %v146_v26 }
  0x99   :  { %v1059_v23 = vpop.eup %1058 }
  0x9a   :  { %171 = vrot.lane.b32.xlu0 %v1059_v23, %s1172_s18 }
  0x9d   :  { %v1061_v27 = vpop.eup %1060 }
  0x9e   :  { %v148_v28 = vadd.f32 1.0, %v1061_v27 }
  0xa0   :  { %1062 = vrcp.f32 %v148_v28  ;;  %v160_v34 = vand.u32 2147483648, %v148_v28  ;;  %vm154_vm3 = vweird.f32 %v148_v28  ;;  %v158_v35 = vand.u32 2147483647, %v148_v28 }
  0xa2   :  { %166 = vrot.lane.b32.xlu0 %v119_v24, %s1172_s18  ;;  %v161_v37 = vor.u32 1.1754944e-38, %v160_v34  ;;  %vm159_vm5 = vcmp.eq.f32.partialorder %v158_v35, 8.507059e+37 }
  0xa6   :  { %v1063_v29 = vpop.eup %1062 }
  0xa7   :  { %v150_v30 = vmul.f32 %v1063_v29, %v148_v28  ;;  %vm155_vm2 = vweird.f32 %v1063_v29 }
  0xa8   :  { %vm156_vm4 = vmor %vm154_vm3, %vm155_vm2 }
  0xa9   :  { %v151_v31 = vsub.f32 1.0, %v150_v30 }
  0xab   :  { %v152_v32 = vmul.f32 %v1063_v29, %v151_v31 }
  0xad   :  { %v153_v33 = vadd.f32 %v1063_v29, %v152_v32 }
  0xaf   :  { %v157_v36 = vsel %vm156_vm4, %v1063_v29, %v153_v33 }
  0xb0   :  { %v162_v39 = vsel %vm159_vm5, %v161_v37, %v157_v36 }
 0x10c   :  { %v172_v38 = vpop.permute.xlu0 %171 }
 0x10d   :  { %v174_v40 = vmul.f32 %v172_v38, %v162_v39 }
 0x10f   :  { %176 = vrot.lane.b32.xlu1 %v174_v40, %s1172_s18 }
 0x114   :  { %v167_v41 = vpop.permute.xlu0 %166 }
 0x115   :  { %v169_v42 = vmul.f32 %v167_v41, %v162_v39 }
 0x181   :  { %v177_v43 = vpop.permute.xlu1 %176 }
 0x182   :  { %v179_v44 = vadd.f32 %v177_v43, %v169_v42 }
 0x184   :  { %1064 = vtanh.f32 %v179_v44  ;;  %v242_v5 = vrot.slane %v179_v44, 6 }
 0x18a   :  { %v1065_v45 = vpop.eup %1064 }
 0x18b   :  { %182 = vrot.lane.b32.xlu1 %v1065_v45, %s1172_s18 }
 0x1fd   :  { %v183_v46 = vpop.permute.xlu1 %182 }
 0x1fe   :  { %v185_v47 = vmul.f32 %v183_v46, %v162_v39 }
 0x200   :  { %187 = vrot.lane.b32.xlu2 %v185_v47, %s1173_s3 }
 0x25a   :  { %v188_v48 = vpop.permute.xlu2 %187 }
 0x25b   :  { %191 = vst.msk [vmem:[#allocation2] sm:$0x3] %vm190_vm6, %v188_v48  ;;  %1038 = vmatmul.msk.f32.vlgmr.msra.gmra.mxu2 %vm120_vm0, %v188_v48 }
 0x25c   :  { %194 = vst.msk [vmem:[#allocation2 + $0xe] sm:$0x3] %vm193_vm7, %v188_v48  ;;  %665 = vmatpush.msra.mxu2 %v1252_v3 }
 0x25e   :  { %666 = vmatpush.msra.mxu2 %v1257_v4 }
 0x260   :  { %667 = vmatpush.msra.mxu2 %v1269_v7 }
 0x262   :  { %668 = vmatpush.msra.mxu2 %v1289_v12 }
 0x2de   :  { %v214_v49 = vpop.f32.mrf.mxu2 }
 0x2df   :  { %v218_v50 = vrot.slane %v214_v49, 6 }
 0x2e1   :  { %v220_v51 = vadd.f32 %v218_v50, %v1335_v21 }
 0x2e3   :  { %1066 = vtanh.f32 %v220_v51  ;;  %v221_v53 = vsub.f32 0.0, %v220_v51 }
 0x2e5   :  { %v222_v54 = vmul.f32 1.442695, %v221_v53 }
 0x2e7   :  { %1068 = vpow2.f32 %v222_v54 }
 0x2e9   :  { %v1067_v52 = vpop.eup %1066 }
 0x2ea   :  { %246 = vrot.lane.b32.xlu2 %v1067_v52, %s1172_s18 }
 0x2ed   :  { %v1069_v55 = vpop.eup %1068 }
 0x2ee   :  { %v224_v56 = vadd.f32 1.0, %v1069_v55 }
 0x2f0   :  { %1070 = vrcp.f32 %v224_v56  ;;  %v236_v62 = vand.u32 2147483648, %v224_v56  ;;  %vm230_vm9 = vweird.f32 %v224_v56  ;;  %v234_v63 = vand.u32 2147483647, %v224_v56 }
 0x2f2   :  { %v237_v1 = vor.u32 1.1754944e-38, %v236_v62  ;;  %vm235_vm11 = vcmp.eq.f32.partialorder %v234_v63, 8.507059e+37 }
 0x2f6   :  { %v1071_v57 = vpop.eup %1070 }
 0x2f7   :  { %v226_v58 = vmul.f32 %v1071_v57, %v224_v56  ;;  %vm231_vm8 = vweird.f32 %v1071_v57 }
 0x2f8   :  { %vm232_vm10 = vmor %vm230_vm9, %vm231_vm8 }
 0x2f9   :  { %v227_v59 = vsub.f32 1.0, %v226_v58 }
 0x2fb   :  { %v228_v60 = vmul.f32 %v1071_v57, %v227_v59 }
 0x2fd   :  { %v229_v61 = vadd.f32 %v1071_v57, %v228_v60 }
 0x2ff   :  { %v233_v0 = vsel %vm232_vm10, %v1071_v57, %v229_v61 }
 0x300   :  { %v238_v3 = vsel %vm235_vm11, %v237_v1, %v233_v0 }
 0x301   :  { %v244_v6 = vmul.f32 %v242_v5, %v238_v3 }
 0x344   :  { %v247_v2 = vpop.permute.xlu2 %246 }
 0x345   :  { %v249_v4 = vmul.f32 %v247_v2, %v238_v3 }
 0x347   :  { %251 = vrot.lane.b32.xlu0 %v249_v4, %s1172_s18 }
 0x3b9   :  { %v252_v7 = vpop.permute.xlu0 %251 }
 0x3ba   :  { %v254_v8 = vadd.f32 %v252_v7, %v244_v6 }
 0x3bc   :  { %1072 = vtanh.f32 %v254_v8  ;;  %v321_v36 = vrot.slane %v254_v8, 6  ;;  %v45_v8 = vld [vmem:[%s1553_s0 + $0x8] sm:$0x3] }
 0x3bd   :  { %77 = vst [vmem:[#allocation1 + $0x20] ss:$4 sm:$0xff] %v45_v8 }
 0x3c2   :  { %v1073_v9 = vpop.eup %1072 }
 0x3c3   :  { %257 = vrot.lane.b32.xlu1 %v1073_v9, %s1172_s18  ;;  %v46_v9 = vld [vmem:[%s1553_s0 + $0xa] sm:$0x3] }
 0x3c4   :  { %79 = vst [vmem:[#allocation1 + $0x21] ss:$4 sm:$0xff] %v46_v9 }
 0x435   :  { %v258_v10 = vpop.permute.xlu1 %257 }
 0x436   :  { %v1357_v11 = vmul.f32 %v258_v10, %v238_v3  ;;  %v47_v10 = vld [vmem:[%s1553_s0 + $0xc] sm:$0x3] }
 0x437   :  { %81 = vst [vmem:[#allocation1 + $0x22] ss:$4 sm:$0xff] %v47_v10 }
 0x438   :  { %v271_v12 = vrot.slane %v1357_v11, 2 }
 0x43a   :  { %272 = vrot.lane.b32.xlu2 %v271_v12, %s1173_s3  ;;  %v48_v12 = vld [vmem:[%s1553_s0 + $0xe] sm:$0x3] }
 0x43b   :  { %83 = vst [vmem:[#allocation1 + $0x23] ss:$4 sm:$0xff] %v48_v12 }
 0x494   :  { %v273_v13 = vpop.permute.xlu2 %272 }
 0x495   :  { %1039 = vmatmul.msk.f32.vlgmr.msra.gmra.mxu3 %vm120_vm0, %v273_v13  ;;  %v85_v13 = vld.sshfl [vmem:[#allocation1 + $0x20] sm:$0xff pattern:$0x73625140] }
 0x496   :  { %1036 = vmatmul.msk.f32.gmra.mxu0 %vm86_vm1, %v85_v13 }
 0x518   :  { %v293_v14 = vpop.f32.mrf.mxu3 }
 0x519   :  { %v297_v15 = vrot.slane %v293_v14, 4 }
 0x51b   :  { %v299_v16 = vadd.f32 %v297_v15, %v1335_v21  ;;  %v111_v15 = vpop.f32.mrf.mxu0 }
 0x51d   :  { %1074 = vtanh.f32 %v299_v16  ;;  %v300_v19 = vsub.f32 0.0, %v299_v16  ;;  %v1394_v16 = vadd.f32 %v1332_v18, %v111_v15 }
 0x51f   :  { %v301_v20 = vmul.f32 1.442695, %v300_v19 }
 0x521   :  { %1076 = vpow2.f32 %v301_v20 }
 0x523   :  { %v1075_v17 = vpop.eup %1074 }
 0x524   :  { %325 = vrot.lane.b32.xlu0 %v1075_v17, %s1172_s18 }
 0x527   :  { %v1077_v22 = vpop.eup %1076 }
 0x528   :  { %v303_v23 = vadd.f32 1.0, %v1077_v22 }
 0x52a   :  { %1078 = vrcp.f32 %v303_v23  ;;  %v315_v29 = vand.u32 2147483648, %v303_v23  ;;  %vm309_vm13 = vweird.f32 %v303_v23  ;;  %v313_v30 = vand.u32 2147483647, %v303_v23 }
 0x52c   :  { %v316_v32 = vor.u32 1.1754944e-38, %v315_v29  ;;  %vm314_vm15 = vcmp.eq.f32.partialorder %v313_v30, 8.507059e+37 }
 0x530   :  { %v1079_v24 = vpop.eup %1078 }
 0x531   :  { %v305_v25 = vmul.f32 %v1079_v24, %v303_v23  ;;  %vm310_vm12 = vweird.f32 %v1079_v24 }
 0x532   :  { %vm311_vm14 = vmor %vm309_vm13, %vm310_vm12 }
 0x533   :  { %v306_v26 = vsub.f32 1.0, %v305_v25 }
 0x535   :  { %v307_v27 = vmul.f32 %v1079_v24, %v306_v26 }
 0x537   :  { %v308_v28 = vadd.f32 %v1079_v24, %v307_v27 }
 0x539   :  { %v312_v31 = vsel %vm311_vm14, %v1079_v24, %v308_v28 }
 0x53a   :  { %v317_v34 = vsel %vm314_vm15, %v316_v32, %v312_v31 }
 0x53b   :  { %v323_v37 = vmul.f32 %v321_v36, %v317_v34 }
 0x596   :  { %v326_v33 = vpop.permute.xlu0 %325 }
 0x597   :  { %v328_v35 = vmul.f32 %v326_v33, %v317_v34 }
 0x599   :  { %330 = vrot.lane.b32.xlu1 %v328_v35, %s1172_s18 }
 0x60b   :  { %v331_v38 = vpop.permute.xlu1 %330 }
 0x60c   :  { %v333_v39 = vadd.f32 %v331_v38, %v323_v37 }
 0x60e   :  { %1080 = vtanh.f32 %v333_v39  ;;  %v400_v0 = vrot.slane %v333_v39, 6 }
 0x614   :  { %v1081_v40 = vpop.eup %1080 }
 0x615   :  { %336 = vrot.lane.b32.xlu2 %v1081_v40, %s1172_s18 }
 0x66f   :  { %v337_v41 = vpop.permute.xlu2 %336 }
 0x670   :  { %v1366_v42 = vmul.f32 %v337_v41, %v317_v34 }
 0x672   :  { %v350_v43 = vrot.slane %v1366_v42, 4 }
 0x674   :  { %351 = vrot.lane.b32.xlu0 %v350_v43, %s1173_s3 }
 0x6e6   :  { %v352_v44 = vpop.permute.xlu0 %351 }
 0x6e7   :  { %1040 = vmatmul.msk.f32.vlgmr.msrb.gmra.mxu1 %vm120_vm0, %v352_v44 }
 0x764   :  { %v372_v45 = vpop.f32.mrf.mxu1 }
 0x765   :  { %v376_v46 = vrot.slane %v372_v45, 2 }
 0x767   :  { %v378_v47 = vadd.f32 %v376_v46, %v1335_v21 }
 0x769   :  { %1082 = vtanh.f32 %v378_v47  ;;  %v379_v49 = vsub.f32 0.0, %v378_v47 }
 0x76b   :  { %v380_v50 = vmul.f32 1.442695, %v379_v49 }
 0x76d   :  { %1084 = vpow2.f32 %v380_v50 }
 0x76f   :  { %v1083_v48 = vpop.eup %1082 }
 0x770   :  { %404 = vrot.lane.b32.xlu1 %v1083_v48, %s1172_s18 }
 0x773   :  { %v1085_v51 = vpop.eup %1084 }
 0x774   :  { %v382_v52 = vadd.f32 1.0, %v1085_v51 }
 0x776   :  { %1086 = vrcp.f32 %v382_v52  ;;  %v394_v58 = vand.u32 2147483648, %v382_v52  ;;  %vm388_vm3 = vweird.f32 %v382_v52  ;;  %v392_v59 = vand.u32 2147483647, %v382_v52 }
 0x778   :  { %v395_v60 = vor.u32 1.1754944e-38, %v394_v58  ;;  %vm393_vm5 = vcmp.eq.f32.partialorder %v392_v59, 8.507059e+37 }
 0x77c   :  { %v1087_v53 = vpop.eup %1086 }
 0x77d   :  { %v384_v54 = vmul.f32 %v1087_v53, %v382_v52  ;;  %vm389_vm2 = vweird.f32 %v1087_v53 }
 0x77e   :  { %vm390_vm4 = vmor %vm388_vm3, %vm389_vm2 }
 0x77f   :  { %v385_v55 = vsub.f32 1.0, %v384_v54 }
 0x781   :  { %v386_v56 = vmul.f32 %v1087_v53, %v385_v55 }
 0x783   :  { %v387_v57 = vadd.f32 %v1087_v53, %v386_v56 }
 0x785   :  { %v391_v21 = vsel %vm390_vm4, %v1087_v53, %v387_v57 }
 0x786   :  { %v396_v62 = vsel %vm393_vm5, %v395_v60, %v391_v21 }
 0x787   :  { %v402_v1 = vmul.f32 %v400_v0, %v396_v62 }
 0x7e2   :  { %v405_v61 = vpop.permute.xlu1 %404 }
 0x7e3   :  { %v407_v63 = vmul.f32 %v405_v61, %v396_v62 }
 0x7e5   :  { %409 = vrot.lane.b32.xlu2 %v407_v63, %s1172_s18 }
 0x83f   :  { %v410_v2 = vpop.permute.xlu2 %409 }
 0x840   :  { %v412_v3 = vadd.f32 %v410_v2, %v402_v1 }
 0x842   :  { %1088 = vtanh.f32 %v412_v3  ;;  %v476_v37 = vrot.slane %v412_v3, 6 }
 0x848   :  { %v1089_v4 = vpop.eup %1088 }
 0x849   :  { %415 = vrot.lane.b32.xlu0 %v1089_v4, %s1172_s18 }
 0x8bb   :  { %v416_v5 = vpop.permute.xlu0 %415 }
 0x8bc   :  { %v1375_v6 = vmul.f32 %v416_v5, %v396_v62 }
 0x8be   :  { %v429_v7 = vrot.slane %v1375_v6, 6 }
 0x8c0   :  { %430 = vrot.lane.b32.xlu1 %v429_v7, %s1173_s3 }
 0x932   :  { %v431_v14 = vpop.permute.xlu1 %430 }
 0x933   :  { %1041 = vmatmul.msk.f32.vlgmr.msrb.gmra.mxu2 %vm120_vm0, %v431_v14 }
 0x9b6   :  { %v451_v17 = vpop.f32.mrf.mxu2 }
 0x9b7   :  { %v454_v19 = vadd.f32 %v451_v17, %v1394_v16 }
 0x9b9   :  { %1090 = vtanh.f32 %v454_v19  ;;  %v455_v22 = vsub.f32 0.0, %v454_v19 }
 0x9bb   :  { %v456_v23 = vmul.f32 1.442695, %v455_v22 }
 0x9bd   :  { %1092 = vpow2.f32 %v456_v23 }
 0x9bf   :  { %v1091_v20 = vpop.eup %1090 }
 0x9c0   :  { %480 = vrot.lane.b32.xlu2 %v1091_v20, %s1172_s18 }
 0x9c3   :  { %v1093_v24 = vpop.eup %1092 }
 0x9c4   :  { %v458_v25 = vadd.f32 1.0, %v1093_v24 }
 0x9c6   :  { %1094 = vrcp.f32 %v458_v25  ;;  %v470_v18 = vand.u32 2147483648, %v458_v25  ;;  %vm464_vm8 = vweird.f32 %v458_v25  ;;  %v468_v31 = vand.u32 2147483647, %v458_v25 }
 0x9c8   :  { %v471_v33 = vor.u32 1.1754944e-38, %v470_v18  ;;  %vm469_vm10 = vcmp.eq.f32.partialorder %v468_v31, 8.507059e+37 }
 0x9cc   :  { %v1095_v26 = vpop.eup %1094 }
 0x9cd   :  { %v460_v27 = vmul.f32 %v1095_v26, %v458_v25  ;;  %vm465_vm1 = vweird.f32 %v1095_v26 }
 0x9ce   :  { %vm466_vm9 = vmor %vm464_vm8, %vm465_vm1 }
 0x9cf   :  { %v461_v28 = vsub.f32 1.0, %v460_v27 }
 0x9d1   :  { %v462_v29 = vmul.f32 %v1095_v26, %v461_v28 }
 0x9d3   :  { %v463_v30 = vadd.f32 %v1095_v26, %v462_v29 }
 0x9d5   :  { %v467_v32 = vsel %vm466_vm9, %v1095_v26, %v463_v30 }
 0x9d6   :  { %v472_v35 = vsel %vm469_vm10, %v471_v33, %v467_v32  ;;  %vm266_vm10 = vcmask 125954  }
 0x9d7   :  { %v478_v38 = vmul.f32 %v476_v37, %v472_v35 }
 0xa1a   :  { %v481_v34 = vpop.permute.xlu2 %480 }
 0xa1b   :  { %v483_v36 = vmul.f32 %v481_v34, %v472_v35 }
 0xa1d   :  { %485 = vrot.lane.b32.xlu0 %v483_v36, %s1172_s18 }
 0xa8f   :  { %v486_v39 = vpop.permute.xlu0 %485 }
 0xa90   :  { %v488_v40 = vadd.f32 %v486_v39, %v478_v38 }
 0xa92   :  { %1096 = vtanh.f32 %v488_v40  ;;  %v548_v1 = vrot.slane %v488_v40, 6 }
 0xa98   :  { %v1097_v41 = vpop.eup %1096 }
 0xa99   :  { %491 = vrot.lane.b32.xlu1 %v1097_v41, %s1172_s18 }
 0xb0b   :  { %v492_v43 = vpop.permute.xlu1 %491 }
 0xb0c   :  { %v494_v44 = vmul.f32 %v492_v43, %v472_v35 }
 0xb0e   :  { %496 = vrot.lane.b32.xlu2 %v494_v44, %s1173_s3 }
 0xb68   :  { %v1401_v45 = vpop.permute.xlu2 %496 }
 0xb69   :  { %1042 = vmatmul.msk.f32.vlgmr.msrb.gmra.mxu3 %vm120_vm0, %v1401_v45 }
 0xbec   :  { %v520_v46 = vpop.f32.mrf.mxu3 }
 0xbed   :  { %v524_v47 = vrot.slane %v520_v46, 6 }
 0xbef   :  { %v526_v48 = vadd.f32 %v524_v47, %v1394_v16 }
 0xbf1   :  { %1098 = vtanh.f32 %v526_v48  ;;  %v527_v50 = vsub.f32 0.0, %v526_v48 }
 0xbf3   :  { %v528_v51 = vmul.f32 1.442695, %v527_v50 }
 0xbf5   :  { %1100 = vpow2.f32 %v528_v51 }
 0xbf7   :  { %v1099_v49 = vpop.eup %1098 }
 0xbf8   :  { %552 = vrot.lane.b32.xlu0 %v1099_v49, %s1172_s18 }
 0xbfb   :  { %v1101_v52 = vpop.eup %1100 }
 0xbfc   :  { %v530_v53 = vadd.f32 1.0, %v1101_v52 }
 0xbfe   :  { %1102 = vrcp.f32 %v530_v53  ;;  %v542_v59 = vand.u32 2147483648, %v530_v53  ;;  %vm536_vm12 = vweird.f32 %v530_v53  ;;  %v540_v21 = vand.u32 2147483647, %v530_v53 }
 0xc00   :  { %v543_v61 = vor.u32 1.1754944e-38, %v542_v59  ;;  %vm541_vm14 = vcmp.eq.f32.partialorder %v540_v21, 8.507059e+37 }
 0xc04   :  { %v1103_v54 = vpop.eup %1102 }
 0xc05   :  { %v532_v55 = vmul.f32 %v1103_v54, %v530_v53  ;;  %vm537_vm11 = vweird.f32 %v1103_v54 }
 0xc06   :  { %vm538_vm13 = vmor %vm536_vm12, %vm537_vm11  ;;  %vm269_vm11 = vcmask 257154   ;;  %vm345_vm12 = vcmask 128004  }
 0xc07   :  { %v533_v56 = vsub.f32 1.0, %v532_v55 }
 0xc09   :  { %v534_v57 = vmul.f32 %v1103_v54, %v533_v56 }
 0xc0b   :  { %v535_v58 = vadd.f32 %v1103_v54, %v534_v57 }
 0xc0d   :  { %v539_v60 = vsel %vm538_vm13, %v1103_v54, %v535_v58  ;;  %vm348_vm13 = vcmask 259204  }
 0xc0e   :  { %v544_v63 = vsel %vm541_vm14, %v543_v61, %v539_v60  ;;  %vm424_vm14 = vcmask 130054  }
 0xc0f   :  { %v550_v2 = vmul.f32 %v548_v1, %v544_v63 }
 0xc6a   :  { %v553_v62 = vpop.permute.xlu0 %552 }
 0xc6b   :  { %v555_v0 = vmul.f32 %v553_v62, %v544_v63 }
 0xc6d   :  { %557 = vrot.lane.b32.xlu1 %v555_v0, %s1172_s18 }
 0xcdf   :  { %v558_v3 = vpop.permute.xlu1 %557 }
 0xce0   :  { %v560_v4 = vadd.f32 %v558_v3, %v550_v2 }
 0xce2   :  { %1104 = vtanh.f32 %v560_v4  ;;  %v623_v34 = vrot.slane %v560_v4, 6 }
 0xce8   :  { %v1105_v5 = vpop.eup %1104 }
 0xce9   :  { %563 = vrot.lane.b32.xlu2 %v1105_v5, %s1172_s18 }
 0xd43   :  { %v564_v7 = vpop.permute.xlu2 %563 }
 0xd44   :  { %v566_v8 = vmul.f32 %v564_v7, %v544_v63 }
 0xd46   :  { %v573_v9 = vrot.slane %v566_v8, 2 }
 0xd48   :  { %574 = vrot.lane.b32.xlu0 %v573_v9, %s1173_s3 }
 0xdba   :  { %v575_v10 = vpop.permute.xlu0 %574 }
 0xdbb   :  { %1043 = vmatmul.msk.f32.vlgmr.msra.gmra.mxu1 %vm120_vm0, %v575_v10 }
 0xe38   :  { %v595_v12 = vpop.f32.mrf.mxu1 }
 0xe39   :  { %v599_v13 = vrot.slane %v595_v12, 4 }
 0xe3b   :  { %v601_v14 = vadd.f32 %v599_v13, %v1394_v16 }
 0xe3d   :  { %1106 = vtanh.f32 %v601_v14  ;;  %v602_v17 = vsub.f32 0.0, %v601_v14 }
 0xe3f   :  { %v603_v19 = vmul.f32 1.442695, %v602_v17  ;;  %v734_v17 = vld [vmem:[%s1559_s6 + $0x18] sm:$0xff] }
 0xe40   :  { %780 = vmatpush.msra.mxu3 %v734_v17 }
 0xe41   :  { %1108 = vpow2.f32 %v603_v19  ;;  %v733_v19 = vld [vmem:[%s1559_s6 + $0x10] sm:$0xff] }
 0xe42   :  { %781 = vmatpush.msra.mxu3 %v733_v19 }
 0xe43   :  { %v1107_v15 = vpop.eup %1106 }
 0xe44   :  { %627 = vrot.lane.b32.xlu1 %v1107_v15, %s1172_s18 }
 0xe47   :  { %v1109_v20 = vpop.eup %1108 }
 0xe48   :  { %v605_v22 = vadd.f32 1.0, %v1109_v20  ;;  %v731_v20 = vld [vmem:[%s1559_s6] sm:$0xff] }
 0xe4a   :  { %1110 = vrcp.f32 %v605_v22  ;;  %v617_v28 = vand.u32 2147483648, %v605_v22  ;;  %vm611_vm2 = vweird.f32 %v605_v22  ;;  %v615_v29 = vand.u32 2147483647, %v605_v22 }
 0xe4c   :  { %v618_v18 = vor.u32 1.1754944e-38, %v617_v28  ;;  %vm616_vm4 = vcmp.eq.f32.partialorder %v615_v29, 8.507059e+37  ;;  %v793_v28 = vld [vmem:[%s1561_s8] sm:$0xff] }
 0xe4d   :  { %v1056_v29 = vld [vmem:[%s1560_s7] ss:$0 sm:$0xff] }
 0xe50   :  { %v1111_v23 = vpop.eup %1110 }
 0xe51   :  { %v607_v24 = vmul.f32 %v1111_v23, %v605_v22  ;;  %vm612_vm15 = vweird.f32 %v1111_v23 }
 0xe52   :  { %vm613_vm3 = vmor %vm611_vm2, %vm612_vm15  ;;  %vm427_vm15 = vcmask 261254  }
 0xe53   :  { %v608_v25 = vsub.f32 1.0, %v607_v24 }
 0xe55   :  { %v609_v26 = vmul.f32 %v1111_v23, %v608_v25 }
 0xe57   :  { %v610_v27 = vadd.f32 %v1111_v23, %v609_v26 }
 0xe59   :  { %v614_v30 = vsel %vm613_vm3, %v1111_v23, %v610_v27  ;;  %v794_v27 = vld [vmem:[%s1561_s8 + $0x8] sm:$0xff] }
 0xe5a   :  { %v619_v32 = vsel %vm616_vm4, %v618_v18, %v614_v30  ;;  %820 = vmatpush.msrb.mxu0 %v794_v27  ;;  %1050 = vmatpush.msrb.mxu2 %v794_v27 }
 0xe5b   :  { %v625_v35 = vmul.f32 %v623_v34, %v619_v32 }
 0xe5c   :  { %821 = vmatpush.msrb.mxu0 %v793_v28  ;;  %1051 = vmatpush.msrb.mxu2 %v793_v28 }
 0xeb6   :  { %v628_v31 = vpop.permute.xlu1 %627 }
 0xeb7   :  { %v630_v33 = vmul.f32 %v628_v31, %v619_v32 }
 0xeb9   :  { %632 = vrot.lane.b32.xlu2 %v630_v33, %s1172_s18 }
 0xf13   :  { %v633_v36 = vpop.permute.xlu2 %632 }
 0xf14   :  { %v635_v37 = vadd.f32 %v633_v36, %v625_v35  ;;  %v1057_v35 = vld [vmem:[%s1562_s9] ss:$0 sm:$0xff] }
 0xf16   :  { %1112 = vtanh.f32 %v635_v37  ;;  %v698_v63 = vrot.slane %v635_v37, 6 }
 0xf1c   :  { %v1113_v38 = vpop.eup %1112 }
 0xf1d   :  { %638 = vrot.lane.b32.xlu0 %v1113_v38, %s1172_s18 }
 0xf8f   :  { %v639_v39 = vpop.permute.xlu0 %638 }
 0xf90   :  { %v641_v40 = vmul.f32 %v639_v39, %v619_v32 }
 0xf92   :  { %v648_v41 = vrot.slane %v641_v40, 4 }
 0xf94   :  { %649 = vrot.lane.b32.xlu1 %v648_v41, %s1173_s3 }
0x1006   :  { %v650_v43 = vpop.permute.xlu1 %649 }
0x1007   :  { %1044 = vmatmul.msk.f32.vlgmr.msra.gmra.mxu2 %vm120_vm0, %v650_v43 }
0x108a   :  { %v670_v44 = vpop.f32.mrf.mxu2 }
0x108b   :  { %v674_v46 = vrot.slane %v670_v44, 2 }
0x108d   :  { %v676_v47 = vadd.f32 %v674_v46, %v1394_v16 }
0x108f   :  { %1114 = vtanh.f32 %v676_v47  ;;  %v677_v49 = vsub.f32 0.0, %v676_v47 }
0x1091   :  { %v678_v50 = vmul.f32 1.442695, %v677_v49 }
0x1093   :  { %1116 = vpow2.f32 %v678_v50 }
0x1095   :  { %v1115_v48 = vpop.eup %1114 }
0x1096   :  { %702 = vrot.lane.b32.xlu2 %v1115_v48, %s1172_s18 }
0x1099   :  { %v1117_v51 = vpop.eup %1116 }
0x109a   :  { %v680_v52 = vadd.f32 1.0, %v1117_v51 }
0x109c   :  { %1118 = vrcp.f32 %v680_v52  ;;  %v692_v57 = vand.u32 2147483648, %v680_v52  ;;  %vm686_vm1 = vweird.f32 %v680_v52  ;;  %v690_v58 = vand.u32 2147483647, %v680_v52 }
0x109e   :  { %262 = vrot.lane.b32.xlu2 %v1357_v11, %s1173_s3  ;;  %v693_v11 = vor.u32 1.1754944e-38, %v692_v57  ;;  %vm691_vm9 = vcmp.eq.f32.partialorder %v690_v58, 8.507059e+37 }
0x10a2   :  { %v1119_v53 = vpop.eup %1118 }
0x10a3   :  { %v682_v54 = vmul.f32 %v1119_v53, %v680_v52  ;;  %vm687_vm5 = vweird.f32 %v1119_v53 }
0x10a4   :  { %vm688_vm8 = vmor %vm686_vm1, %vm687_vm5  ;;  %vm952_vm1 = vcmask 254976  }
0x10a5   :  { %v683_v55 = vsub.f32 1.0, %v682_v54 }
0x10a6   :  { %568 = vrot.lane.b32.xlu2 %v566_v8, %s1173_s3 }
0x10a7   :  { %v684_v56 = vmul.f32 %v1119_v53, %v683_v55 }
0x10a9   :  { %v685_v16 = vadd.f32 %v1119_v53, %v684_v56 }
0x10ab   :  { %v689_v59 = vsel %vm688_vm8, %v1119_v53, %v685_v16 }
0x10ac   :  { %v694_v60 = vsel %vm691_vm9, %v693_v11, %v689_v59 }
0x10ad   :  { %v700_v0 = vmul.f32 %v698_v63, %v694_v60 }
0x10f0   :  { %v703_v21 = vpop.permute.xlu2 %702 }
0x10f1   :  { %v705_v61 = vmul.f32 %v703_v21, %v694_v60 }
0x10f3   :  { %707 = vrot.lane.b32.xlu0 %v705_v61, %s1172_s18 }
0x10f8   :  { %v263_v62 = vpop.permute.xlu2 %262 }
0x10f9   :  { %267 = vst.msk [vmem:[#allocation2] sm:$0xc] %vm266_vm10, %v263_v62 }
0x10fa   :  { %270 = vst.msk [vmem:[#allocation2 + $0xa] sm:$0xc] %vm269_vm11, %v263_v62 }
0x10fb   :  { %341 = vrot.lane.b32.xlu0 %v1366_v42, %s1173_s3 }
0x1100   :  { %v569_v5 = vpop.permute.xlu2 %568 }
0x1103   :  { %643 = vrot.lane.b32.xlu0 %v641_v40, %s1173_s3 }
0x1165   :  { %v708_v1 = vpop.permute.xlu0 %707 }
0x1166   :  { %v710_v2 = vadd.f32 %v708_v1, %v700_v0 }
0x1168   :  { %1120 = vtanh.f32 %v710_v2 }
0x116d   :  { %v342_v3 = vpop.permute.xlu0 %341 }
0x116e   :  { %v1121_v4 = vpop.eup %1120  ;;  %346 = vst.msk [vmem:[#allocation2] sm:$0x30] %vm345_vm12, %v342_v3 }
0x116f   :  { %349 = vst.msk [vmem:[#allocation2 + $0x6] sm:$0x30] %vm348_vm13, %v342_v3  ;;  %713 = vrot.lane.b32.xlu1 %v1121_v4, %s1172_s18 }
0x1170   :  { %571 = vst.msk [vmem:[#allocation2 + $0x8] sm:$0xc] %vm266_vm10, %v569_v5 }
0x1171   :  { %572 = vst.msk [vmem:[#allocation2 + $0x2] sm:$0xc] %vm269_vm11, %v569_v5  ;;  %vm1013_vm11 = vcmask 25600  }
0x1175   :  { %v644_v42 = vpop.permute.xlu0 %643 }
0x1176   :  { %646 = vst.msk [vmem:[#allocation2 + $0x8] sm:$0x30] %vm345_vm12, %v644_v42 }
0x1177   :  { %647 = vst.msk [vmem:[#allocation2 - $0x2] sm:$0x30] %vm348_vm13, %v644_v42  ;;  %420 = vrot.lane.b32.xlu1 %v1375_v6, %s1173_s3  ;;  %v1433_v7 = vld [vmem:[#allocation2 + $0xa] sm:$0x3] }
0x1178   :  { %v1435_v8 = vld [vmem:[#allocation2 + $0x4] sm:$0x3]  ;;  %757 = vst [vmem:[#allocation1 + $0x21] ss:$4 sm:$0xff] %v1433_v7 }
0x1179   :  { %751 = vst [vmem:[#allocation1 + $0x2] ss:$4 sm:$0xff] %v1435_v8 }
0x117d   :  { %v1439_v9 = vld [vmem:[#allocation2 + $0xc] sm:$0x3] }
0x117e   :  { %v1441_v10 = vld [vmem:[#allocation2 + $0x2] sm:$0x3]  ;;  %759 = vst [vmem:[#allocation1 + $0x22] ss:$4 sm:$0xff] %v1439_v9 }
0x117f   :  { %749 = vst [vmem:[#allocation1 + $0x1] ss:$4 sm:$0xff] %v1441_v10 }
0x11e1   :  { %v714_v12 = vpop.permute.xlu1 %713 }
0x11e2   :  { %v716_v13 = vmul.f32 %v714_v12, %v694_v60 }
0x11e4   :  { %718 = vrot.lane.b32.xlu1 %v716_v13, %s1173_s3 }
0x11e9   :  { %v421_v6 = vpop.permute.xlu1 %420 }
0x11ea   :  { %425 = vst.msk [vmem:[#allocation2] sm:$0xc0] %vm424_vm14, %v421_v6 }
0x11eb   :  { %428 = vst.msk [vmem:[#allocation2 + $0x2] sm:$0xc0] %vm427_vm15, %v421_v6 }
0x11ec   :  { %499 = vst.msk [vmem:[#allocation2 + $0x8] sm:$0x3] %vm190_vm6, %v1401_v45  ;;  %vm799_vm6 = vcmask 130048  }
0x11ed   :  { %500 = vst.msk [vmem:[#allocation2 + $0x6] sm:$0x3] %vm193_vm7, %v1401_v45  ;;  %v732_v45 = vld [vmem:[%s1559_s6 + $0x8] sm:$0xff]  ;;  %vm843_vm7 = vcmask 17408  }
0x11ee   :  { %782 = vmatpush.msra.mxu3 %v732_v45 }
0x11f0   :  { %783 = vmatpush.msra.mxu3 %v731_v20 }
0x11f3   :  { %v1452_v14 = vld [vmem:[#allocation2 + $0x8] sm:$0x3] }
0x11f4   :  { %v1454_v15 = vld [vmem:[#allocation2 + $0x6] sm:$0x3]  ;;  %755 = vst [vmem:[#allocation1 + $0x20] ss:$4 sm:$0xff] %v1452_v14 }
0x11f5   :  { %753 = vst [vmem:[#allocation1 + $0x3] ss:$4 sm:$0xff] %v1454_v15 }
0x1256   :  { %v719_v22 = vpop.permute.xlu1 %718 }
0x1257   :  { %721 = vst.msk [vmem:[#allocation2 + $0x8] sm:$0xc0] %vm424_vm14, %v719_v22 }
0x1258   :  { %722 = vst.msk [vmem:[#allocation2 - $0x6] sm:$0xc0] %vm427_vm15, %v719_v22 }
0x125e   :  { %v1472_v23 = vld [vmem:[#allocation2 + $0xe] sm:$0x3] }
0x125f   :  { %v1474_v24 = vld [vmem:[#allocation2] sm:$0x3]  ;;  %761 = vst [vmem:[#allocation1 + $0x23] ss:$4 sm:$0xff] %v1472_v23 }
0x1260   :  { %747 = vst [vmem:[#allocation1] ss:$4 sm:$0xff] %v1474_v24 }
0x1266   :  { %v763_v26 = vld.sshfl [vmem:[#allocation1 + $0x20] sm:$0xff pattern:$0x73625140] }
0x1267   :  { %v762_v25 = vld.sshfl [vmem:[#allocation1] sm:$0xff pattern:$0x73625140] }
0x1268   :  { %1045 = vmatmul.msk.f32.vlgmr.msra.gmra.mxu3 %vm120_vm0, %v762_v25 }
0x1270   :  { %1046 = vmatmul.msk.f32.gmra.mxu3 %vm120_vm0, %v763_v26 }
0x12eb   :  { %v785_v30 = vpop.f32.mrf.mxu3 }
0x12ec   :  { %v786_v18 = vadd.f32 %v1056_v29, %v785_v30 }
0x12ee   :  { %1122 = vtanh.f32 %v786_v18 }
0x12f3   :  { %v788_v31 = vpop.f32.mrf.mxu3 }
0x12f4   :  { %v1123_v32 = vpop.eup %1122  ;;  %v789_v33 = vadd.f32 %v1056_v29, %v788_v31 }
0x12f5   :  { %1047 = vmatmul.msk.f32.vlgmr.msrb.gmra.mxu0 %vm799_vm6, %v1123_v32 }
0x12f6   :  { %1124 = vtanh.f32 %v789_v33 }
0x12fc   :  { %v1125_v34 = vpop.eup %1124 }
0x12fd   :  { %1048 = vmatmul.msk.f32.vlgmr.msrb.gmra.mxu2 %vm799_vm6, %v1125_v34 }
0x1372   :  { %v823_v36 = vpop.f32.mrf.mxu0 }
0x1373   :  { %v824_v37 = vadd.f32 %v1057_v35, %v823_v36 }
0x1375   :  { %v831_v38 = vrot.slane %v824_v37, 2  ;;  %v833_v39 = vrot.slane %v824_v37, 6  ;;  %v832_v43 = vrot.slane %v824_v37, 4  ;;  %v844_v49 = vsel %vm843_vm7, %v824_v37, -inf }
0x1377   :  { %v845_v50 = vsel %vm843_vm7, %v831_v38, -inf  ;;  %v847_v51 = vsel %vm843_vm7, %v833_v39, -inf  ;;  %v846_v55 = vsel %vm843_vm7, %v832_v43, -inf }
0x1380   :  { %v826_v40 = vpop.f32.mrf.mxu2 }
0x1381   :  { %v827_v41 = vadd.f32 %v1057_v35, %v826_v40 }
0x1383   :  { %v834_v44 = vrot.slane %v827_v41, 2  ;;  %v835_v46 = vrot.slane %v827_v41, 4  ;;  %v836_v47 = vrot.slane %v827_v41, 6  ;;  %v848_v48 = vsel %vm843_vm7, %v827_v41, -inf }
0x1384   :  { %v849_v56 = vmax.f32 %v844_v49, %v848_v48 }
0x1385   :  { %v850_v52 = vsel %vm843_vm7, %v834_v44, -inf  ;;  %v852_v53 = vsel %vm843_vm7, %v835_v46, -inf  ;;  %v854_v54 = vsel %vm843_vm7, %v836_v47, -inf }
0x1386   :  { %v851_v16 = vmax.f32 %v845_v50, %v850_v52  ;;  %v855_v57 = vmax.f32 %v847_v51, %v854_v54  ;;  %v853_v58 = vmax.f32 %v846_v55, %v852_v53 }
0x1388   :  { %v856_v59 = vmax.f32 %v849_v56, %v851_v16  ;;  %v857_v11 = vmax.f32 %v853_v58, %v855_v57 }
0x138a   :  { %v858_v21 = vmax.f32 %v856_v59, %v857_v11 }
0x138c   :  { %v859_v60 = vsub.f32 %v824_v37, %v858_v21  ;;  %v860_v61 = vsub.f32 %v831_v38, %v858_v21  ;;  %v861_v62 = vsub.f32 %v832_v43, %v858_v21  ;;  %v862_v63 = vsub.f32 %v833_v39, %v858_v21 }
0x138d   :  { %v863_v0 = vsub.f32 %v827_v41, %v858_v21  ;;  %v864_v4 = vsub.f32 %v834_v44, %v858_v21  ;;  %v865_v42 = vsub.f32 %v835_v46, %v858_v21  ;;  %v866_v13 = vsub.f32 %v836_v47, %v858_v21 }
0x138e   :  { %v867_v1 = vmul.f32 1.442695, %v859_v60  ;;  %v869_v2 = vmul.f32 1.442695, %v860_v61  ;;  %v871_v3 = vmul.f32 1.442695, %v861_v62 }
0x138f   :  { %v873_v5 = vmul.f32 1.442695, %v862_v63  ;;  %v875_v12 = vmul.f32 1.442695, %v863_v0  ;;  %v877_v6 = vmul.f32 1.442695, %v864_v4 }
0x1390   :  { %1126 = vpow2.f32 %v867_v1  ;;  %v879_v17 = vmul.f32 1.442695, %v865_v42  ;;  %v881_v20 = vmul.f32 1.442695, %v866_v13 }
0x1391   :  { %1128 = vpow2.f32 %v869_v2 }
0x1392   :  { %1130 = vpow2.f32 %v871_v3 }
0x1393   :  { %1132 = vpow2.f32 %v873_v5 }
0x1394   :  { %1134 = vpow2.f32 %v875_v12 }
0x1395   :  { %1136 = vpow2.f32 %v877_v6 }
0x1396   :  { %v1127_v19 = vpop.eup %1126  ;;  %1138 = vpow2.f32 %v879_v17 }
0x1397   :  { %v1129_v45 = vpop.eup %1128  ;;  %v883_v22 = vsel %vm843_vm7, %v1127_v19, 0.0  ;;  %1140 = vpow2.f32 %v881_v20 }
0x1398   :  { %v1131_v25 = vpop.eup %1130  ;;  %v884_v26 = vsel %vm843_vm7, %v1129_v45, 0.0 }
0x1399   :  { %v1133_v27 = vpop.eup %1132  ;;  %v885_v28 = vadd.f32 %v884_v26, %v883_v22  ;;  %v886_v29 = vsel %vm843_vm7, %v1131_v25, 0.0 }
0x139a   :  { %v1135_v30 = vpop.eup %1134  ;;  %v888_v31 = vsel %vm843_vm7, %v1133_v27, 0.0 }
0x139b   :  { %v887_v18 = vadd.f32 %v886_v29, %v885_v28  ;;  %v1137_v32 = vpop.eup %1136  ;;  %v890_v34 = vsel %vm843_vm7, %v1135_v30, 0.0 }
0x139c   :  { %v1139_v35 = vpop.eup %1138  ;;  %v892_v37 = vsel %vm843_vm7, %v1137_v32, 0.0 }
0x139d   :  { %v889_v33 = vadd.f32 %v888_v31, %v887_v18  ;;  %v1141_v38 = vpop.eup %1140  ;;  %v894_v40 = vsel %vm843_vm7, %v1139_v35, 0.0 }
0x139e   :  { %v896_v43 = vsel %vm843_vm7, %v1141_v38, 0.0 }
0x139f   :  { %v891_v36 = vadd.f32 %v890_v34, %v889_v33 }
0x13a1   :  { %v893_v39 = vadd.f32 %v892_v37, %v891_v36 }
0x13a3   :  { %v895_v41 = vadd.f32 %v894_v40, %v893_v39 }
0x13a5   :  { %v897_v44 = vadd.f32 %v896_v43, %v895_v41  ;;  %v988_v43 = vld [vmem:[%s1563_s10 + $0x10] sm:$0xff] }
0x13a7   :  { %1142 = vrcp.f32 %v897_v44  ;;  %v909_v49 = vand.u32 2147483648, %v897_v44  ;;  %v907_v51 = vand.u32 2147483647, %v897_v44  ;;  %vm903_vm3 = vweird.f32 %v897_v44 }
0x13a9   :  { %v910_v53 = vor.u32 1.1754944e-38, %v909_v49  ;;  %vm908_vm5 = vcmp.eq.f32.partialorder %v907_v51, 8.507059e+37 }
0x13ad   :  { %v1143_v46 = vpop.eup %1142 }
0x13ae   :  { %v899_v47 = vmul.f32 %v1143_v46, %v897_v44  ;;  %vm904_vm2 = vweird.f32 %v1143_v46  ;;  %v986_v44 = vld [vmem:[%s1563_s10] sm:$0xff] }
0x13af   :  { %vm905_vm4 = vmor %vm903_vm3, %vm904_vm2 }
0x13b0   :  { %v900_v48 = vsub.f32 1.0, %v899_v47 }
0x13b2   :  { %v901_v50 = vmul.f32 %v1143_v46, %v900_v48 }
0x13b4   :  { %v902_v52 = vadd.f32 %v1143_v46, %v901_v50 }
0x13b6   :  { %v906_v54 = vsel %vm905_vm4, %v1143_v46, %v902_v52 }
0x13b7   :  { %v911_v55 = vsel %vm908_vm5, %v910_v53, %v906_v54 }
0x13b8   :  { %v914_v56 = vmul.f32 %v1131_v25, %v911_v55  ;;  %v913_v16 = vmul.f32 %v1129_v45, %v911_v55  ;;  %v912_v57 = vmul.f32 %v1127_v19, %v911_v55  ;;  %v918_v21 = vmul.f32 %v1139_v35, %v911_v55 }
0x13b9   :  { %v917_v60 = vmul.f32 %v1137_v32, %v911_v55  ;;  %v915_v61 = vmul.f32 %v1133_v27, %v911_v55  ;;  %v916_v1 = vmul.f32 %v1135_v30, %v911_v55  ;;  %v919_v3 = vmul.f32 %v1141_v38, %v911_v55 }
0x13ba   :  { %v926_v58 = vsel %vm843_vm7, %v914_v56, 0.0  ;;  %v923_v59 = vsel %vm843_vm7, %v913_v16, 0.0  ;;  %v920_v11 = vsel %vm843_vm7, %v912_v57, 0.0  ;;  %v938_v62 = vsel %vm843_vm7, %v918_v21, 0.0 }
0x13bb   :  { %927 = vadd.xlane.f32.xlu1 %v926_v58  ;;  %924 = vadd.xlane.f32.xlu0 %v923_v59  ;;  %v935_v63 = vsel %vm843_vm7, %v917_v60, 0.0  ;;  %v929_v0 = vsel %vm843_vm7, %v915_v61, 0.0  ;;  %v932_v2 = vsel %vm843_vm7, %v916_v1, 0.0  ;;  %v941_v4 = vsel %vm843_vm7, %v919_v3, 0.0 }
0x13bc   :  { %921 = vadd.xlane.f32.xlu2 %v920_v11 }
0x13c3   :  { %939 = vadd.xlane.f32.xlu1 %v938_v62  ;;  %936 = vadd.xlane.f32.xlu0 %v935_v63 }
0x13c4   :  { %930 = vadd.xlane.f32.xlu2 %v929_v0 }
0x13cc   :  { %933 = vadd.xlane.f32.xlu2 %v932_v2 }
0x13d4   :  { %942 = vadd.xlane.f32.xlu2 %v941_v4 }
0x142e   :  { %v925_v42 = vpop.xlane.xlu0 %924  ;;  %v928_v6 = vpop.xlane.xlu1 %927 }
0x142f   :  { %v922_v5 = vpop.xlane.xlu2 %921  ;;  %v945_v12 = vmul.f32 %v925_v42, %v1441_v10  ;;  %v946_v20 = vmul.f32 %v928_v6, %v1435_v8 }
0x1430   :  { %v944_v13 = vmul.f32 %v922_v5, %v1474_v24 }
0x1431   :  { %v954_v19 = vsel %vm952_vm1, %v945_v12, 0.0  ;;  %v956_v27 = vsel %vm952_vm1, %v946_v20, 0.0 }
0x1432   :  { %v953_v45 = vsel %vm952_vm1, %v944_v13, 0.0 }
0x1433   :  { %v955_v25 = vadd.f32 %v954_v19, %v953_v45 }
0x1435   :  { %v957_v10 = vadd.f32 %v956_v27, %v955_v25 }
0x1436   :  { %v937_v26 = vpop.xlane.xlu0 %936  ;;  %v940_v18 = vpop.xlane.xlu1 %939 }
0x1437   :  { %v931_v17 = vpop.xlane.xlu2 %930  ;;  %v949_v24 = vmul.f32 %v937_v26, %v1433_v7  ;;  %v950_v8 = vmul.f32 %v940_v18, %v1439_v9  ;;  %v989_v9 = vld [vmem:[%s1563_s10 + $0x18] sm:$0xff] }
0x1438   :  { %v947_v22 = vmul.f32 %v931_v17, %v1454_v15  ;;  %1005 = vmatpush.msrb.mxu1 %v989_v9 }
0x1439   :  { %v962_v15 = vsel %vm952_vm1, %v949_v24, 0.0  ;;  %v964_v36 = vsel %vm952_vm1, %v950_v8, 0.0 }
0x143a   :  { %v958_v28 = vsel %vm952_vm1, %v947_v22, 0.0  ;;  %1006 = vmatpush.msrb.mxu1 %v988_v43 }
0x143b   :  { %v959_v31 = vadd.f32 %v958_v28, %v957_v10 }
0x143f   :  { %v934_v29 = vpop.xlane.xlu2 %933 }
0x1440   :  { %v948_v30 = vmul.f32 %v934_v29, %v1452_v14 }
0x1442   :  { %v960_v32 = vsel %vm952_vm1, %v948_v30, 0.0 }
0x1443   :  { %v961_v33 = vadd.f32 %v960_v32, %v959_v31 }
0x1445   :  { %v963_v34 = vadd.f32 %v962_v15, %v961_v33 }
0x1447   :  { %v943_v35 = vpop.xlane.xlu2 %942  ;;  %v965_v38 = vadd.f32 %v964_v36, %v963_v34 }
0x1448   :  { %v951_v37 = vmul.f32 %v943_v35, %v1472_v23  ;;  %v987_v23 = vld [vmem:[%s1563_s10 + $0x8] sm:$0xff]  ;;  %s1022_s10 = sshll.u32 %s1564_s11, 4  ;;  %s1023_s10 = int_to_ptr.hbm [resolvable:$true] %s1022_s10 }
0x1449   :  { %1007 = vmatpush.msrb.mxu1 %v987_v23 }
0x144a   :  { %v966_v7 = vsel %vm952_vm1, %v951_v37, 0.0 }
0x144b   :  { %v967_v39 = vadd.f32 %v966_v7, %v965_v38  ;;  %1008 = vmatpush.msrb.mxu1 %v986_v44 }
0x144d   :  { %v968_v14 = vmul.f32 0.33333334, %v967_v39 }
0x144f   :  { %v969_v40 = vmul.f32 %v968_v14, %v968_v14 }
0x1451   :  { %v970_v41 = vsel %vm952_vm1, %v969_v40, 0.0 }
0x1452   :  { %971 = vadd.xlane.f32.xlu0 %v970_v41 }
0x14c5   :  { %v972_v46 = vpop.xlane.xlu0 %971 }
0x14c6   :  { %v973_v47 = vadd.f32 1e-12, %v972_v46 }
0x14c8   :  { %1144 = vrsqrt.f32 %v973_v47  ;;  %vm980_vm9 = vweird.f32 %v973_v47 }
0x14ce   :  { %v1145_v48 = vpop.eup %1144 }
0x14cf   :  { %v975_v49 = vmul.f32 %v1145_v48, %v973_v47  ;;  %vm981_vm8 = vweird.f32 %v1145_v48 }
0x14d0   :  { %vm982_vm10 = vmor %vm980_vm9, %vm981_vm8 }
0x14d1   :  { %v976_v50 = vmul.f32 %v1145_v48, %v975_v49 }
0x14d3   :  { %v977_v51 = vmul.f32 0.5, %v976_v50 }
0x14d5   :  { %v978_v52 = vsub.f32 1.5, %v977_v51 }
0x14d7   :  { %v979_v53 = vmul.f32 %v1145_v48, %v978_v52 }
0x14d9   :  { %v983_v54 = vsel %vm982_vm10, %v1145_v48, %v979_v53 }
0x14da   :  { %v984_v55 = vmul.f32 %v983_v54, %v968_v14 }
0x14dc   :  { %985 = vst.msk [vmem:[#allocation3] sm:$0x3] %vm952_vm1, %v984_v55  ;;  %1049 = vmatmul.msk.f32.vlgmr.msrb.gmra.mxu1 %vm120_vm0, %v984_v55 }
0x14dd   :  { %1025 = dma.vmem_to_hbm [thread:$0]  %s1021_s27, 32, %s1023_s10, [#allocation4]  }
0x1559   :  { %v1010_v56 = vpop.f32.mrf.mxu1 }
0x155a   :  { %1014 = vst.msk [vmem:[%s1565_s12] sm:$0x3] %vm1013_vm11, %v1010_v56 }
0x155b   :  { %1170 = dma.done.wait [#allocation4], 32  }
0x155c   :  { %1171 = vsyncadd [#allocation4], 4294967264 }
0x155d   :  { %1034 = vsyncpa [#allocation4], 1 }

</bundles_post_ra>
